<compile_context>
chip_gen: v6e
topology: v6e:2x2x1
jax: 0.10.0
libtpu: 0.0.40
codegen_flags: <defaults>
</compile_context>

<pallas_src>
import functools

import jax
import jax.numpy as jnp
from jax.experimental import pallas as pl
from jax.experimental.pallas import tpu as pltpu


def _music_lstm2_kernel(x_ref, w_ih0_ref, w_ihk_ref, w_hh_ref, b_ref,
                        w_lin_ref, b_lin_ref, out_ref,
                        seq_sc, gx_sc, *, seq_len, batch_pad, hidden_size,
                        num_layers):
    T, Bp, H, L = seq_len, batch_pad, hidden_size, num_layers

    h = jnp.zeros((Bp, H), jnp.float32)

    for l in range(L):  # layers: static unroll (L is small and fixed)
        # ---- x-path: ONE fused (T*Bp, K) @ (K, 4H) matmul per layer (off the
        # ---- serial critical path), gates packed along lanes (4H = 128 =>
        # ---- lane-dense), bias folded in, single unmasked full-width store.
        if l == 0:
            inp = x_ref[...]                       # (T*Bp, I)
            w_ih = w_ih0_ref[...]                  # (I, 4H)
        else:
            inp = seq_sc[...]                      # (T*Bp, H) prev layer out
            w_ih = w_ihk_ref[l - 1]                # (H, 4H)
        gx_sc[...] = (jnp.dot(inp, w_ih, preferred_element_type=jnp.float32)
                      + b_ref[l])                  # (T*Bp, 4H) + (1, 4H)

        # Recurrent weights for this layer stay vreg-resident across the
        # whole time loop: (H, 4H) = (32, 128) f32 -> 4 dense vregs.
        w_hh_l = w_hh_ref[l]

        h = jnp.zeros((Bp, H), jnp.float32)
        c = jnp.zeros((Bp, H), jnp.float32)

        # ---- serial recurrence, fully static unroll (T tiny & fixed).  One
        # ---- MXU push + 2 full-vreg EUP passes per step; gate extraction is
        # ---- static 32-lane slices (XLU rotates, off the VPU/EUP slots).
        for t in range(T):
            lo = t * Bp                            # multiple of 8: aligned
            pre = gx_sc[pl.ds(lo, Bp), :] + jnp.dot(
                h, w_hh_l, preferred_element_type=jnp.float32)   # (Bp, 4H)

            sg = jax.nn.sigmoid(pre)               # one EUP pass, full vreg
            th = jnp.tanh(pre)                     # one EUP pass, full vreg

            i_t = sg[:, 0 * H:1 * H]
            f_t = sg[:, 1 * H:2 * H]
            g_t = th[:, 2 * H:3 * H]
            o_t = sg[:, 3 * H:4 * H]

            c = f_t * c + i_t * g_t
            h = o_t * jnp.tanh(c)

            if l < L - 1:
                # Tile-aligned stash for the next layer's batched x-path.
                seq_sc[pl.ds(lo, Bp), :] = h

    # Fused Linear head on hidden[-1] (last layer, last time step).
    out_ref[...] = (jnp.dot(h, w_lin_ref[...],
                            preferred_element_type=jnp.float32)
                    + b_lin_ref[...]).astype(out_ref.dtype)


def music_lstm2_forward(x, params):
    """x: (B, T, I) float32, batch_first like the PyTorch module."""
    B, T, I = x.shape
    L, H, _ = params["w_hh"].shape
    O = params["w_lin"].shape[1]

    # Pad batch up to a sublane multiple (8): every per-timestep scratch
    # window becomes (8,128)-tile aligned, for free (a (2,*) operand already
    # occupies a full vreg).  Padded rows never mix with real rows.
    Bp = max(8, ((B + 7) // 8) * 8)
    x_p = jnp.zeros((Bp, T, I), x.dtype).at[:B].set(x)
    # Time-major, flattened: a single VMEM-resident (T*Bp, I) slab.
    x_flat = jnp.transpose(x_p, (1, 0, 2)).reshape(T * Bp, I)

    kernel = functools.partial(_music_lstm2_kernel, seq_len=T, batch_pad=Bp,
                               hidden_size=H, num_layers=L)

    out = pl.pallas_call(
        kernel,
        out_shape=jax.ShapeDtypeStruct((Bp, O), jnp.float32),
        # Grid-less: inputs + weights + scratch (~100 KiB) are VMEM-resident;
        # a grid/BlockSpec pipeline would only re-introduce per-step overhead.
        scratch_shapes=[
            pltpu.VMEM((T * Bp, H), jnp.float32),      # layer-output sequence
            pltpu.VMEM((T * Bp, 4 * H), jnp.float32),  # lane-packed preacts
        ],
    )(x_flat, params["w_ih0"], params["w_ihk"], params["w_hh"], params["b"],
      params["w_lin"], params["b_lin"])
    return out[:B]


def make_params(w_ih_list, w_hh_list, b_list, w_lin, b_lin):
    """PyTorch layouts -> lane-packed kernel layouts.

    PyTorch packs gates [i, f, g, o] along the rows of the (4H, K) weights; a
    plain transpose gives the (K, 4H) lane-packed layout the kernel wants.
    """
    L = len(w_ih_list)
    H = w_hh_list[0].shape[1]
    w_ih0 = w_ih_list[0].T                                       # (I, 4H)
    if L > 1:
        w_ihk = jnp.stack([w.T for w in w_ih_list[1:]])          # (L-1, H, 4H)
    else:
        w_ihk = jnp.zeros((1, H, 4 * H), jnp.float32)
    w_hh = jnp.stack([w.T for w in w_hh_list])                   # (L, H, 4H)
    b = jnp.stack([bb[None, :] for bb in b_list])                # (L, 1, 4H)
    return dict(w_ih0=w_ih0, w_ihk=w_ihk, w_hh=w_hh, b=b,
                w_lin=w_lin.T, b_lin=b_lin[None, :])


def reference_forward(x, w_ih_list, w_hh_list, b_list, w_lin, b_lin, H):
    """Pure-JAX reference of the PyTorch forward (eval mode), raw layouts."""
    B, T, _ = x.shape
    layer_in = x
    h = None
    for layer in range(len(w_ih_list)):
        w_ih, w_hh, b = w_ih_list[layer], w_hh_list[layer], b_list[layer]
        h = jnp.zeros((B, H), jnp.float32)
        c = jnp.zeros((B, H), jnp.float32)
        outs = []
        for t in range(T):
            gates = layer_in[:, t, :] @ w_ih.T + h @ w_hh.T + b
            i_g = jax.nn.sigmoid(gates[:, 0 * H:1 * H])
            f_g = jax.nn.sigmoid(gates[:, 1 * H:2 * H])
            g_g = jnp.tanh(gates[:, 2 * H:3 * H])
            o_g = jax.nn.sigmoid(gates[:, 3 * H:4 * H])
            c = f_g * c + i_g * g_g
            h = o_g * jnp.tanh(c)
            outs.append(h)
        layer_in = jnp.stack(outs, axis=1)
    return h @ w_lin.T + b_lin


if __name__ == "__main__":
    # Module hyper-parameters (small, consistent with MusicLSTM2.__init__).
    num_note_classes = 20
    num_duration_classes = 12
    input_size = num_note_classes + num_duration_classes   # 32
    hidden_size = 32
    num_layers = 2
    batch = 2
    seq_len = 8

    key = jax.random.PRNGKey(0)
    keys = jax.random.split(key, 4 * num_layers + 3)
    bound = 1.0 / jnp.sqrt(jnp.float32(hidden_size))

    def u(kk, shape):
        return jax.random.uniform(kk, shape, jnp.float32, -bound, bound)

    w_ih_list, w_hh_list, b_list = [], [], []
    ki = 0
    for layer in range(num_layers):
        in_dim = input_size if layer == 0 else hidden_size
        w_ih = u(keys[ki], (4 * hidden_size, in_dim)); ki += 1
        w_hh = u(keys[ki], (4 * hidden_size, hidden_size)); ki += 1
        b_ih = u(keys[ki], (4 * hidden_size,)); ki += 1
        b_hh = u(keys[ki], (4 * hidden_size,)); ki += 1
        w_ih_list.append(w_ih)
        w_hh_list.append(w_hh)
        b_list.append(b_ih + b_hh)

    w_lin = u(keys[ki], (input_size, hidden_size)); ki += 1
    b_lin = u(keys[ki], (input_size,)); ki += 1

    x = jax.random.normal(keys[ki], (batch, seq_len, input_size), jnp.float32)

    params = make_params(w_ih_list, w_hh_list, b_list, w_lin, b_lin)

    out = music_lstm2_forward(x, params)
    out = jax.block_until_ready(out)

    ref = reference_forward(x, w_ih_list, w_hh_list, b_list, w_lin, b_lin,
                            hidden_size)
    assert out.shape == (batch, input_size)
    max_err = float(jnp.max(jnp.abs(out - ref)))
    assert jnp.allclose(out, ref, atol=1e-2, rtol=1e-2), max_err

    print("KERNEL_OK")
</pallas_src>

<mosaic_0001>
module attributes {stable_mosaic.version = 11 : i64} {
  func.func @_music_lstm2_kernel(%arg0: memref<64x32xf32, #tpu.memory_space<vmem>>, %arg1: memref<32x128xf32, #tpu.memory_space<vmem>>, %arg2: memref<1x32x128xf32, #tpu.memory_space<vmem>>, %arg3: memref<2x32x128xf32, #tpu.memory_space<vmem>>, %arg4: memref<2x1x128xf32, #tpu.memory_space<vmem>>, %arg5: memref<32x32xf32, #tpu.memory_space<vmem>>, %arg6: memref<1x32xf32, #tpu.memory_space<vmem>>, %arg7: memref<8x32xf32, #tpu.memory_space<vmem>>, %arg8: memref<64x32xf32, #tpu.memory_space<vmem>>, %arg9: memref<64x128xf32, #tpu.memory_space<vmem>>) attributes {dimension_semantics = [], scalar_prefetch = 0 : i64, scratch_operands = 2 : i64, tpu.core_type = #tpu.core_type<tc>} {
    %c0 = arith.constant 0 : index
    %c0_0 = arith.constant 0 : index
    %0 = vector.load %arg0[%c0, %c0_0] : memref<64x32xf32, #tpu.memory_space<vmem>>, vector<64x32xf32>
    %c0_1 = arith.constant 0 : index
    %c0_2 = arith.constant 0 : index
    %1 = vector.load %arg1[%c0_1, %c0_2] : memref<32x128xf32, #tpu.memory_space<vmem>>, vector<32x128xf32>
    %cst = arith.constant dense<0.000000e+00> : vector<64x128xf32>
    %2 = tpu.matmul %0, %1, %cst {dimension_numbers = #tpu.dot_dimension_numbers<[1], [0], [0], [1], [0, 0, 1, 1], [], []>} : vector<64x32xf32>, vector<32x128xf32>, vector<64x128xf32> -> vector<64x128xf32>
    %c0_3 = arith.constant 0 : index
    %c0_4 = arith.constant 0 : index
    %c0_5 = arith.constant 0 : index
    %3 = vector.load %arg4[%c0_3, %c0_4, %c0_5] : memref<2x1x128xf32, #tpu.memory_space<vmem>>, vector<1x1x128xf32>
    %4 = vector.shape_cast %3 : vector<1x1x128xf32> to vector<1x128xf32>
    %5 = vector.broadcast %4 : vector<1x128xf32> to vector<64x128xf32>
    %6 = arith.addf %2, %5 : vector<64x128xf32>
    %c0_6 = arith.constant 0 : index
    %c0_7 = arith.constant 0 : index
    %7 = vector.load %arg9[%c0_6, %c0_7] : memref<64x128xf32, #tpu.memory_space<vmem>>, vector<64x128xf32>
    tpu.vector_store %arg9[%c0_6, %c0_7], %6 {strides = array<i32>} : memref<64x128xf32, #tpu.memory_space<vmem>>, vector<64x128xf32>,
    %c0_8 = arith.constant 0 : index
    %c0_9 = arith.constant 0 : index
    %c0_10 = arith.constant 0 : index
    %8 = vector.load %arg3[%c0_8, %c0_9, %c0_10] : memref<2x32x128xf32, #tpu.memory_space<vmem>>, vector<1x32x128xf32>
    %9 = vector.shape_cast %8 : vector<1x32x128xf32> to vector<32x128xf32>
    %cst_11 = arith.constant 0.000000e+00 : f32
    %10 = vector.broadcast %cst_11 : f32 to vector<8x32xf32>
    %cst_12 = arith.constant 0.000000e+00 : f32
    %11 = vector.broadcast %cst_12 : f32 to vector<8x32xf32>
    %c0_13 = arith.constant 0 : index
    %c0_14 = arith.constant 0 : index
    %12 = vector.load %arg9[%c0_13, %c0_14] : memref<64x128xf32, #tpu.memory_space<vmem>>, vector<8x128xf32>
    %cst_15 = arith.constant dense<0.000000e+00> : vector<8x128xf32>
    %13 = tpu.matmul %10, %9, %cst_15 {dimension_numbers = #tpu.dot_dimension_numbers<[1], [0], [0], [1], [0, 0, 1, 1], [], []>} : vector<8x32xf32>, vector<32x128xf32>, vector<8x128xf32> -> vector<8x128xf32>
    %14 = arith.addf %12, %13 : vector<8x128xf32>
    %15 = arith.negf %14 : vector<8x128xf32>
    %16 = math.exp %15 : vector<8x128xf32>
    %cst_16 = arith.constant 1.000000e+00 : f32
    %17 = vector.broadcast %cst_16 : f32 to vector<8x128xf32>
    %18 = arith.addf %17, %16 : vector<8x128xf32>
    %19 = arith.divf %17, %18 : vector<8x128xf32>
    %20 = math.tanh %14 : vector<8x128xf32>
    %21 = vector.extract_strided_slice %19 {offsets = [0, 0], sizes = [8, 32], strides = [1, 1]} : vector<8x128xf32> to vector<8x32xf32>
    %22 = vector.extract_strided_slice %19 {offsets = [0, 32], sizes = [8, 32], strides = [1, 1]} : vector<8x128xf32> to vector<8x32xf32>
    %23 = vector.extract_strided_slice %20 {offsets = [0, 64], sizes = [8, 32], strides = [1, 1]} : vector<8x128xf32> to vector<8x32xf32>
    %24 = vector.extract_strided_slice %19 {offsets = [0, 96], sizes = [8, 32], strides = [1, 1]} : vector<8x128xf32> to vector<8x32xf32>
    %25 = arith.mulf %22, %11 : vector<8x32xf32>
    %26 = arith.mulf %21, %23 : vector<8x32xf32>
    %27 = arith.addf %25, %26 : vector<8x32xf32>
    %28 = math.tanh %27 : vector<8x32xf32>
    %29 = arith.mulf %24, %28 : vector<8x32xf32>
    %c0_17 = arith.constant 0 : index
    %c0_18 = arith.constant 0 : index
    %30 = vector.load %arg8[%c0_17, %c0_18] : memref<64x32xf32, #tpu.memory_space<vmem>>, vector<8x32xf32>
    tpu.vector_store %arg8[%c0_17, %c0_18], %29 {strides = array<i32>} : memref<64x32xf32, #tpu.memory_space<vmem>>, vector<8x32xf32>,
    %c8 = arith.constant 8 : index
    %c0_19 = arith.constant 0 : index
    %31 = vector.load %arg9[%c8, %c0_19] : memref<64x128xf32, #tpu.memory_space<vmem>>, vector<8x128xf32>
    %cst_20 = arith.constant dense<0.000000e+00> : vector<8x128xf32>
    %32 = tpu.matmul %29, %9, %cst_20 {dimension_numbers = #tpu.dot_dimension_numbers<[1], [0], [0], [1], [0, 0, 1, 1], [], []>} : vector<8x32xf32>, vector<32x128xf32>, vector<8x128xf32> -> vector<8x128xf32>
    %33 = arith.addf %31, %32 : vector<8x128xf32>
    %34 = arith.negf %33 : vector<8x128xf32>
    %35 = math.exp %34 : vector<8x128xf32>
    %cst_21 = arith.constant 1.000000e+00 : f32
    %36 = vector.broadcast %cst_21 : f32 to vector<8x128xf32>
    %37 = arith.addf %36, %35 : vector<8x128xf32>
    %38 = arith.divf %36, %37 : vector<8x128xf32>
    %39 = math.tanh %33 : vector<8x128xf32>
    %40 = vector.extract_strided_slice %38 {offsets = [0, 0], sizes = [8, 32], strides = [1, 1]} : vector<8x128xf32> to vector<8x32xf32>
    %41 = vector.extract_strided_slice %38 {offsets = [0, 32], sizes = [8, 32], strides = [1, 1]} : vector<8x128xf32> to vector<8x32xf32>
    %42 = vector.extract_strided_slice %39 {offsets = [0, 64], sizes = [8, 32], strides = [1, 1]} : vector<8x128xf32> to vector<8x32xf32>
    %43 = vector.extract_strided_slice %38 {offsets = [0, 96], sizes = [8, 32], strides = [1, 1]} : vector<8x128xf32> to vector<8x32xf32>
    %44 = arith.mulf %41, %27 : vector<8x32xf32>
    %45 = arith.mulf %40, %42 : vector<8x32xf32>
    %46 = arith.addf %44, %45 : vector<8x32xf32>
    %47 = math.tanh %46 : vector<8x32xf32>
    %48 = arith.mulf %43, %47 : vector<8x32xf32>
    %c8_22 = arith.constant 8 : index
    %c0_23 = arith.constant 0 : index
    %49 = vector.load %arg8[%c8_22, %c0_23] : memref<64x32xf32, #tpu.memory_space<vmem>>, vector<8x32xf32>
    tpu.vector_store %arg8[%c8_22, %c0_23], %48 {strides = array<i32>} : memref<64x32xf32, #tpu.memory_space<vmem>>, vector<8x32xf32>,
    %c16 = arith.constant 16 : index
    %c0_24 = arith.constant 0 : index
    %50 = vector.load %arg9[%c16, %c0_24] : memref<64x128xf32, #tpu.memory_space<vmem>>, vector<8x128xf32>
    %cst_25 = arith.constant dense<0.000000e+00> : vector<8x128xf32>
    %51 = tpu.matmul %48, %9, %cst_25 {dimension_numbers = #tpu.dot_dimension_numbers<[1], [0], [0], [1], [0, 0, 1, 1], [], []>} : vector<8x32xf32>, vector<32x128xf32>, vector<8x128xf32> -> vector<8x128xf32>
    %52 = arith.addf %50, %51 : vector<8x128xf32>
    %53 = arith.negf %52 : vector<8x128xf32>
    %54 = math.exp %53 : vector<8x128xf32>
    %cst_26 = arith.constant 1.000000e+00 : f32
    %55 = vector.broadcast %cst_26 : f32 to vector<8x128xf32>
    %56 = arith.addf %55, %54 : vector<8x128xf32>
    %57 = arith.divf %55, %56 : vector<8x128xf32>
    %58 = math.tanh %52 : vector<8x128xf32>
    %59 = vector.extract_strided_slice %57 {offsets = [0, 0], sizes = [8, 32], strides = [1, 1]} : vector<8x128xf32> to vector<8x32xf32>
    %60 = vector.extract_strided_slice %57 {offsets = [0, 32], sizes = [8, 32], strides = [1, 1]} : vector<8x128xf32> to vector<8x32xf32>
    %61 = vector.extract_strided_slice %58 {offsets = [0, 64], sizes = [8, 32], strides = [1, 1]} : vector<8x128xf32> to vector<8x32xf32>
    %62 = vector.extract_strided_slice %57 {offsets = [0, 96], sizes = [8, 32], strides = [1, 1]} : vector<8x128xf32> to vector<8x32xf32>
    %63 = arith.mulf %60, %46 : vector<8x32xf32>
    %64 = arith.mulf %59, %61 : vector<8x32xf32>
    %65 = arith.addf %63, %64 : vector<8x32xf32>
    %66 = math.tanh %65 : vector<8x32xf32>
    %67 = arith.mulf %62, %66 : vector<8x32xf32>
    %c16_27 = arith.constant 16 : index
    %c0_28 = arith.constant 0 : index
    %68 = vector.load %arg8[%c16_27, %c0_28] : memref<64x32xf32, #tpu.memory_space<vmem>>, vector<8x32xf32>
    tpu.vector_store %arg8[%c16_27, %c0_28], %67 {strides = array<i32>} : memref<64x32xf32, #tpu.memory_space<vmem>>, vector<8x32xf32>,
    %c24 = arith.constant 24 : index
    %c0_29 = arith.constant 0 : index
    %69 = vector.load %arg9[%c24, %c0_29] : memref<64x128xf32, #tpu.memory_space<vmem>>, vector<8x128xf32>
    %cst_30 = arith.constant dense<0.000000e+00> : vector<8x128xf32>
    %70 = tpu.matmul %67, %9, %cst_30 {dimension_numbers = #tpu.dot_dimension_numbers<[1], [0], [0], [1], [0, 0, 1, 1], [], []>} : vector<8x32xf32>, vector<32x128xf32>, vector<8x128xf32> -> vector<8x128xf32>
    %71 = arith.addf %69, %70 : vector<8x128xf32>
    %72 = arith.negf %71 : vector<8x128xf32>
    %73 = math.exp %72 : vector<8x128xf32>
    %cst_31 = arith.constant 1.000000e+00 : f32
    %74 = vector.broadcast %cst_31 : f32 to vector<8x128xf32>
    %75 = arith.addf %74, %73 : vector<8x128xf32>
    %76 = arith.divf %74, %75 : vector<8x128xf32>
    %77 = math.tanh %71 : vector<8x128xf32>
    %78 = vector.extract_strided_slice %76 {offsets = [0, 0], sizes = [8, 32], strides = [1, 1]} : vector<8x128xf32> to vector<8x32xf32>
    %79 = vector.extract_strided_slice %76 {offsets = [0, 32], sizes = [8, 32], strides = [1, 1]} : vector<8x128xf32> to vector<8x32xf32>
    %80 = vector.extract_strided_slice %77 {offsets = [0, 64], sizes = [8, 32], strides = [1, 1]} : vector<8x128xf32> to vector<8x32xf32>
    %81 = vector.extract_strided_slice %76 {offsets = [0, 96], sizes = [8, 32], strides = [1, 1]} : vector<8x128xf32> to vector<8x32xf32>
    %82 = arith.mulf %79, %65 : vector<8x32xf32>
    %83 = arith.mulf %78, %80 : vector<8x32xf32>
    %84 = arith.addf %82, %83 : vector<8x32xf32>
    %85 = math.tanh %84 : vector<8x32xf32>
    %86 = arith.mulf %81, %85 : vector<8x32xf32>
    %c24_32 = arith.constant 24 : index
    %c0_33 = arith.constant 0 : index
    %87 = vector.load %arg8[%c24_32, %c0_33] : memref<64x32xf32, #tpu.memory_space<vmem>>, vector<8x32xf32>
    tpu.vector_store %arg8[%c24_32, %c0_33], %86 {strides = array<i32>} : memref<64x32xf32, #tpu.memory_space<vmem>>, vector<8x32xf32>,
    %c32 = arith.constant 32 : index
    %c0_34 = arith.constant 0 : index
    %88 = vector.load %arg9[%c32, %c0_34] : memref<64x128xf32, #tpu.memory_space<vmem>>, vector<8x128xf32>
    %cst_35 = arith.constant dense<0.000000e+00> : vector<8x128xf32>
    %89 = tpu.matmul %86, %9, %cst_35 {dimension_numbers = #tpu.dot_dimension_numbers<[1], [0], [0], [1], [0, 0, 1, 1], [], []>} : vector<8x32xf32>, vector<32x128xf32>, vector<8x128xf32> -> vector<8x128xf32>
    %90 = arith.addf %88, %89 : vector<8x128xf32>
    %91 = arith.negf %90 : vector<8x128xf32>
    %92 = math.exp %91 : vector<8x128xf32>
    %cst_36 = arith.constant 1.000000e+00 : f32
    %93 = vector.broadcast %cst_36 : f32 to vector<8x128xf32>
    %94 = arith.addf %93, %92 : vector<8x128xf32>
    %95 = arith.divf %93, %94 : vector<8x128xf32>
    %96 = math.tanh %90 : vector<8x128xf32>
    %97 = vector.extract_strided_slice %95 {offsets = [0, 0], sizes = [8, 32], strides = [1, 1]} : vector<8x128xf32> to vector<8x32xf32>
    %98 = vector.extract_strided_slice %95 {offsets = [0, 32], sizes = [8, 32], strides = [1, 1]} : vector<8x128xf32> to vector<8x32xf32>
    %99 = vector.extract_strided_slice %96 {offsets = [0, 64], sizes = [8, 32], strides = [1, 1]} : vector<8x128xf32> to vector<8x32xf32>
    %100 = vector.extract_strided_slice %95 {offsets = [0, 96], sizes = [8, 32], strides = [1, 1]} : vector<8x128xf32> to vector<8x32xf32>
    %101 = arith.mulf %98, %84 : vector<8x32xf32>
    %102 = arith.mulf %97, %99 : vector<8x32xf32>
    %103 = arith.addf %101, %102 : vector<8x32xf32>
    %104 = math.tanh %103 : vector<8x32xf32>
    %105 = arith.mulf %100, %104 : vector<8x32xf32>
    %c32_37 = arith.constant 32 : index
    %c0_38 = arith.constant 0 : index
    %106 = vector.load %arg8[%c32_37, %c0_38] : memref<64x32xf32, #tpu.memory_space<vmem>>, vector<8x32xf32>
    tpu.vector_store %arg8[%c32_37, %c0_38], %105 {strides = array<i32>} : memref<64x32xf32, #tpu.memory_space<vmem>>, vector<8x32xf32>,
    %c40 = arith.constant 40 : index
    %c0_39 = arith.constant 0 : index
    %107 = vector.load %arg9[%c40, %c0_39] : memref<64x128xf32, #tpu.memory_space<vmem>>, vector<8x128xf32>
    %cst_40 = arith.constant dense<0.000000e+00> : vector<8x128xf32>
    %108 = tpu.matmul %105, %9, %cst_40 {dimension_numbers = #tpu.dot_dimension_numbers<[1], [0], [0], [1], [0, 0, 1, 1], [], []>} : vector<8x32xf32>, vector<32x128xf32>, vector<8x128xf32> -> vector<8x128xf32>
    %109 = arith.addf %107, %108 : vector<8x128xf32>
    %110 = arith.negf %109 : vector<8x128xf32>
    %111 = math.exp %110 : vector<8x128xf32>
    %cst_41 = arith.constant 1.000000e+00 : f32
    %112 = vector.broadcast %cst_41 : f32 to vector<8x128xf32>
    %113 = arith.addf %112, %111 : vector<8x128xf32>
    %114 = arith.divf %112, %113 : vector<8x128xf32>
    %115 = math.tanh %109 : vector<8x128xf32>
    %116 = vector.extract_strided_slice %114 {offsets = [0, 0], sizes = [8, 32], strides = [1, 1]} : vector<8x128xf32> to vector<8x32xf32>
    %117 = vector.extract_strided_slice %114 {offsets = [0, 32], sizes = [8, 32], strides = [1, 1]} : vector<8x128xf32> to vector<8x32xf32>
    %118 = vector.extract_strided_slice %115 {offsets = [0, 64], sizes = [8, 32], strides = [1, 1]} : vector<8x128xf32> to vector<8x32xf32>
    %119 = vector.extract_strided_slice %114 {offsets = [0, 96], sizes = [8, 32], strides = [1, 1]} : vector<8x128xf32> to vector<8x32xf32>
    %120 = arith.mulf %117, %103 : vector<8x32xf32>
    %121 = arith.mulf %116, %118 : vector<8x32xf32>
    %122 = arith.addf %120, %121 : vector<8x32xf32>
    %123 = math.tanh %122 : vector<8x32xf32>
    %124 = arith.mulf %119, %123 : vector<8x32xf32>
    %c40_42 = arith.constant 40 : index
    %c0_43 = arith.constant 0 : index
    %125 = vector.load %arg8[%c40_42, %c0_43] : memref<64x32xf32, #tpu.memory_space<vmem>>, vector<8x32xf32>
    tpu.vector_store %arg8[%c40_42, %c0_43], %124 {strides = array<i32>} : memref<64x32xf32, #tpu.memory_space<vmem>>, vector<8x32xf32>,
    %c48 = arith.constant 48 : index
    %c0_44 = arith.constant 0 : index
    %126 = vector.load %arg9[%c48, %c0_44] : memref<64x128xf32, #tpu.memory_space<vmem>>, vector<8x128xf32>
    %cst_45 = arith.constant dense<0.000000e+00> : vector<8x128xf32>
    %127 = tpu.matmul %124, %9, %cst_45 {dimension_numbers = #tpu.dot_dimension_numbers<[1], [0], [0], [1], [0, 0, 1, 1], [], []>} : vector<8x32xf32>, vector<32x128xf32>, vector<8x128xf32> -> vector<8x128xf32>
    %128 = arith.addf %126, %127 : vector<8x128xf32>
    %129 = arith.negf %128 : vector<8x128xf32>
    %130 = math.exp %129 : vector<8x128xf32>
    %cst_46 = arith.constant 1.000000e+00 : f32
    %131 = vector.broadcast %cst_46 : f32 to vector<8x128xf32>
    %132 = arith.addf %131, %130 : vector<8x128xf32>
    %133 = arith.divf %131, %132 : vector<8x128xf32>
    %134 = math.tanh %128 : vector<8x128xf32>
    %135 = vector.extract_strided_slice %133 {offsets = [0, 0], sizes = [8, 32], strides = [1, 1]} : vector<8x128xf32> to vector<8x32xf32>
    %136 = vector.extract_strided_slice %133 {offsets = [0, 32], sizes = [8, 32], strides = [1, 1]} : vector<8x128xf32> to vector<8x32xf32>
    %137 = vector.extract_strided_slice %134 {offsets = [0, 64], sizes = [8, 32], strides = [1, 1]} : vector<8x128xf32> to vector<8x32xf32>
    %138 = vector.extract_strided_slice %133 {offsets = [0, 96], sizes = [8, 32], strides = [1, 1]} : vector<8x128xf32> to vector<8x32xf32>
    %139 = arith.mulf %136, %122 : vector<8x32xf32>
    %140 = arith.mulf %135, %137 : vector<8x32xf32>
    %141 = arith.addf %139, %140 : vector<8x32xf32>
    %142 = math.tanh %141 : vector<8x32xf32>
    %143 = arith.mulf %138, %142 : vector<8x32xf32>
    %c48_47 = arith.constant 48 : index
    %c0_48 = arith.constant 0 : index
    %144 = vector.load %arg8[%c48_47, %c0_48] : memref<64x32xf32, #tpu.memory_space<vmem>>, vector<8x32xf32>
    tpu.vector_store %arg8[%c48_47, %c0_48], %143 {strides = array<i32>} : memref<64x32xf32, #tpu.memory_space<vmem>>, vector<8x32xf32>,
    %c56 = arith.constant 56 : index
    %c0_49 = arith.constant 0 : index
    %145 = vector.load %arg9[%c56, %c0_49] : memref<64x128xf32, #tpu.memory_space<vmem>>, vector<8x128xf32>
    %cst_50 = arith.constant dense<0.000000e+00> : vector<8x128xf32>
    %146 = tpu.matmul %143, %9, %cst_50 {dimension_numbers = #tpu.dot_dimension_numbers<[1], [0], [0], [1], [0, 0, 1, 1], [], []>} : vector<8x32xf32>, vector<32x128xf32>, vector<8x128xf32> -> vector<8x128xf32>
    %147 = arith.addf %145, %146 : vector<8x128xf32>
    %148 = arith.negf %147 : vector<8x128xf32>
    %149 = math.exp %148 : vector<8x128xf32>
    %cst_51 = arith.constant 1.000000e+00 : f32
    %150 = vector.broadcast %cst_51 : f32 to vector<8x128xf32>
    %151 = arith.addf %150, %149 : vector<8x128xf32>
    %152 = arith.divf %150, %151 : vector<8x128xf32>
    %153 = math.tanh %147 : vector<8x128xf32>
    %154 = vector.extract_strided_slice %152 {offsets = [0, 0], sizes = [8, 32], strides = [1, 1]} : vector<8x128xf32> to vector<8x32xf32>
    %155 = vector.extract_strided_slice %152 {offsets = [0, 32], sizes = [8, 32], strides = [1, 1]} : vector<8x128xf32> to vector<8x32xf32>
    %156 = vector.extract_strided_slice %153 {offsets = [0, 64], sizes = [8, 32], strides = [1, 1]} : vector<8x128xf32> to vector<8x32xf32>
    %157 = vector.extract_strided_slice %152 {offsets = [0, 96], sizes = [8, 32], strides = [1, 1]} : vector<8x128xf32> to vector<8x32xf32>
    %158 = arith.mulf %155, %141 : vector<8x32xf32>
    %159 = arith.mulf %154, %156 : vector<8x32xf32>
    %160 = arith.addf %158, %159 : vector<8x32xf32>
    %161 = math.tanh %160 : vector<8x32xf32>
    %162 = arith.mulf %157, %161 : vector<8x32xf32>
    %c56_52 = arith.constant 56 : index
    %c0_53 = arith.constant 0 : index
    %163 = vector.load %arg8[%c56_52, %c0_53] : memref<64x32xf32, #tpu.memory_space<vmem>>, vector<8x32xf32>
    tpu.vector_store %arg8[%c56_52, %c0_53], %162 {strides = array<i32>} : memref<64x32xf32, #tpu.memory_space<vmem>>, vector<8x32xf32>,
    %c0_54 = arith.constant 0 : index
    %c0_55 = arith.constant 0 : index
    %164 = vector.load %arg8[%c0_54, %c0_55] : memref<64x32xf32, #tpu.memory_space<vmem>>, vector<64x32xf32>
    %c0_56 = arith.constant 0 : index
    %c0_57 = arith.constant 0 : index
    %c0_58 = arith.constant 0 : index
    %165 = vector.load %arg2[%c0_56, %c0_57, %c0_58] : memref<1x32x128xf32, #tpu.memory_space<vmem>>, vector<1x32x128xf32>
    %166 = vector.shape_cast %165 : vector<1x32x128xf32> to vector<32x128xf32>
    %cst_59 = arith.constant dense<0.000000e+00> : vector<64x128xf32>
    %167 = tpu.matmul %164, %166, %cst_59 {dimension_numbers = #tpu.dot_dimension_numbers<[1], [0], [0], [1], [0, 0, 1, 1], [], []>} : vector<64x32xf32>, vector<32x128xf32>, vector<64x128xf32> -> vector<64x128xf32>
    %c1 = arith.constant 1 : index
    %c0_60 = arith.constant 0 : index
    %c0_61 = arith.constant 0 : index
    %168 = vector.load %arg4[%c1, %c0_60, %c0_61] : memref<2x1x128xf32, #tpu.memory_space<vmem>>, vector<1x1x128xf32>
    %169 = vector.shape_cast %168 : vector<1x1x128xf32> to vector<1x128xf32>
    %170 = vector.broadcast %169 : vector<1x128xf32> to vector<64x128xf32>
    %171 = arith.addf %167, %170 : vector<64x128xf32>
    %c0_62 = arith.constant 0 : index
    %c0_63 = arith.constant 0 : index
    %172 = vector.load %arg9[%c0_62, %c0_63] : memref<64x128xf32, #tpu.memory_space<vmem>>, vector<64x128xf32>
    tpu.vector_store %arg9[%c0_62, %c0_63], %171 {strides = array<i32>} : memref<64x128xf32, #tpu.memory_space<vmem>>, vector<64x128xf32>,
    %c1_64 = arith.constant 1 : index
    %c0_65 = arith.constant 0 : index
    %c0_66 = arith.constant 0 : index
    %173 = vector.load %arg3[%c1_64, %c0_65, %c0_66] : memref<2x32x128xf32, #tpu.memory_space<vmem>>, vector<1x32x128xf32>
    %174 = vector.shape_cast %173 : vector<1x32x128xf32> to vector<32x128xf32>
    %cst_67 = arith.constant 0.000000e+00 : f32
    %175 = vector.broadcast %cst_67 : f32 to vector<8x32xf32>
    %cst_68 = arith.constant 0.000000e+00 : f32
    %176 = vector.broadcast %cst_68 : f32 to vector<8x32xf32>
    %c0_69 = arith.constant 0 : index
    %c0_70 = arith.constant 0 : index
    %177 = vector.load %arg9[%c0_69, %c0_70] : memref<64x128xf32, #tpu.memory_space<vmem>>, vector<8x128xf32>
    %cst_71 = arith.constant dense<0.000000e+00> : vector<8x128xf32>
    %178 = tpu.matmul %175, %174, %cst_71 {dimension_numbers = #tpu.dot_dimension_numbers<[1], [0], [0], [1], [0, 0, 1, 1], [], []>} : vector<8x32xf32>, vector<32x128xf32>, vector<8x128xf32> -> vector<8x128xf32>
    %179 = arith.addf %177, %178 : vector<8x128xf32>
    %180 = arith.negf %179 : vector<8x128xf32>
    %181 = math.exp %180 : vector<8x128xf32>
    %cst_72 = arith.constant 1.000000e+00 : f32
    %182 = vector.broadcast %cst_72 : f32 to vector<8x128xf32>
    %183 = arith.addf %182, %181 : vector<8x128xf32>
    %184 = arith.divf %182, %183 : vector<8x128xf32>
    %185 = math.tanh %179 : vector<8x128xf32>
    %186 = vector.extract_strided_slice %184 {offsets = [0, 0], sizes = [8, 32], strides = [1, 1]} : vector<8x128xf32> to vector<8x32xf32>
    %187 = vector.extract_strided_slice %184 {offsets = [0, 32], sizes = [8, 32], strides = [1, 1]} : vector<8x128xf32> to vector<8x32xf32>
    %188 = vector.extract_strided_slice %185 {offsets = [0, 64], sizes = [8, 32], strides = [1, 1]} : vector<8x128xf32> to vector<8x32xf32>
    %189 = vector.extract_strided_slice %184 {offsets = [0, 96], sizes = [8, 32], strides = [1, 1]} : vector<8x128xf32> to vector<8x32xf32>
    %190 = arith.mulf %187, %176 : vector<8x32xf32>
    %191 = arith.mulf %186, %188 : vector<8x32xf32>
    %192 = arith.addf %190, %191 : vector<8x32xf32>
    %193 = math.tanh %192 : vector<8x32xf32>
    %194 = arith.mulf %189, %193 : vector<8x32xf32>
    %c8_73 = arith.constant 8 : index
    %c0_74 = arith.constant 0 : index
    %195 = vector.load %arg9[%c8_73, %c0_74] : memref<64x128xf32, #tpu.memory_space<vmem>>, vector<8x128xf32>
    %cst_75 = arith.constant dense<0.000000e+00> : vector<8x128xf32>
    %196 = tpu.matmul %194, %174, %cst_75 {dimension_numbers = #tpu.dot_dimension_numbers<[1], [0], [0], [1], [0, 0, 1, 1], [], []>} : vector<8x32xf32>, vector<32x128xf32>, vector<8x128xf32> -> vector<8x128xf32>
    %197 = arith.addf %195, %196 : vector<8x128xf32>
    %198 = arith.negf %197 : vector<8x128xf32>
    %199 = math.exp %198 : vector<8x128xf32>
    %cst_76 = arith.constant 1.000000e+00 : f32
    %200 = vector.broadcast %cst_76 : f32 to vector<8x128xf32>
    %201 = arith.addf %200, %199 : vector<8x128xf32>
    %202 = arith.divf %200, %201 : vector<8x128xf32>
    %203 = math.tanh %197 : vector<8x128xf32>
    %204 = vector.extract_strided_slice %202 {offsets = [0, 0], sizes = [8, 32], strides = [1, 1]} : vector<8x128xf32> to vector<8x32xf32>
    %205 = vector.extract_strided_slice %202 {offsets = [0, 32], sizes = [8, 32], strides = [1, 1]} : vector<8x128xf32> to vector<8x32xf32>
    %206 = vector.extract_strided_slice %203 {offsets = [0, 64], sizes = [8, 32], strides = [1, 1]} : vector<8x128xf32> to vector<8x32xf32>
    %207 = vector.extract_strided_slice %202 {offsets = [0, 96], sizes = [8, 32], strides = [1, 1]} : vector<8x128xf32> to vector<8x32xf32>
    %208 = arith.mulf %205, %192 : vector<8x32xf32>
    %209 = arith.mulf %204, %206 : vector<8x32xf32>
    %210 = arith.addf %208, %209 : vector<8x32xf32>
    %211 = math.tanh %210 : vector<8x32xf32>
    %212 = arith.mulf %207, %211 : vector<8x32xf32>
    %c16_77 = arith.constant 16 : index
    %c0_78 = arith.constant 0 : index
    %213 = vector.load %arg9[%c16_77, %c0_78] : memref<64x128xf32, #tpu.memory_space<vmem>>, vector<8x128xf32>
    %cst_79 = arith.constant dense<0.000000e+00> : vector<8x128xf32>
    %214 = tpu.matmul %212, %174, %cst_79 {dimension_numbers = #tpu.dot_dimension_numbers<[1], [0], [0], [1], [0, 0, 1, 1], [], []>} : vector<8x32xf32>, vector<32x128xf32>, vector<8x128xf32> -> vector<8x128xf32>
    %215 = arith.addf %213, %214 : vector<8x128xf32>
    %216 = arith.negf %215 : vector<8x128xf32>
    %217 = math.exp %216 : vector<8x128xf32>
    %cst_80 = arith.constant 1.000000e+00 : f32
    %218 = vector.broadcast %cst_80 : f32 to vector<8x128xf32>
    %219 = arith.addf %218, %217 : vector<8x128xf32>
    %220 = arith.divf %218, %219 : vector<8x128xf32>
    %221 = math.tanh %215 : vector<8x128xf32>
    %222 = vector.extract_strided_slice %220 {offsets = [0, 0], sizes = [8, 32], strides = [1, 1]} : vector<8x128xf32> to vector<8x32xf32>
    %223 = vector.extract_strided_slice %220 {offsets = [0, 32], sizes = [8, 32], strides = [1, 1]} : vector<8x128xf32> to vector<8x32xf32>
    %224 = vector.extract_strided_slice %221 {offsets = [0, 64], sizes = [8, 32], strides = [1, 1]} : vector<8x128xf32> to vector<8x32xf32>
    %225 = vector.extract_strided_slice %220 {offsets = [0, 96], sizes = [8, 32], strides = [1, 1]} : vector<8x128xf32> to vector<8x32xf32>
    %226 = arith.mulf %223, %210 : vector<8x32xf32>
    %227 = arith.mulf %222, %224 : vector<8x32xf32>
    %228 = arith.addf %226, %227 : vector<8x32xf32>
    %229 = math.tanh %228 : vector<8x32xf32>
    %230 = arith.mulf %225, %229 : vector<8x32xf32>
    %c24_81 = arith.constant 24 : index
    %c0_82 = arith.constant 0 : index
    %231 = vector.load %arg9[%c24_81, %c0_82] : memref<64x128xf32, #tpu.memory_space<vmem>>, vector<8x128xf32>
    %cst_83 = arith.constant dense<0.000000e+00> : vector<8x128xf32>
    %232 = tpu.matmul %230, %174, %cst_83 {dimension_numbers = #tpu.dot_dimension_numbers<[1], [0], [0], [1], [0, 0, 1, 1], [], []>} : vector<8x32xf32>, vector<32x128xf32>, vector<8x128xf32> -> vector<8x128xf32>
    %233 = arith.addf %231, %232 : vector<8x128xf32>
    %234 = arith.negf %233 : vector<8x128xf32>
    %235 = math.exp %234 : vector<8x128xf32>
    %cst_84 = arith.constant 1.000000e+00 : f32
    %236 = vector.broadcast %cst_84 : f32 to vector<8x128xf32>
    %237 = arith.addf %236, %235 : vector<8x128xf32>
    %238 = arith.divf %236, %237 : vector<8x128xf32>
    %239 = math.tanh %233 : vector<8x128xf32>
    %240 = vector.extract_strided_slice %238 {offsets = [0, 0], sizes = [8, 32], strides = [1, 1]} : vector<8x128xf32> to vector<8x32xf32>
    %241 = vector.extract_strided_slice %238 {offsets = [0, 32], sizes = [8, 32], strides = [1, 1]} : vector<8x128xf32> to vector<8x32xf32>
    %242 = vector.extract_strided_slice %239 {offsets = [0, 64], sizes = [8, 32], strides = [1, 1]} : vector<8x128xf32> to vector<8x32xf32>
    %243 = vector.extract_strided_slice %238 {offsets = [0, 96], sizes = [8, 32], strides = [1, 1]} : vector<8x128xf32> to vector<8x32xf32>
    %244 = arith.mulf %241, %228 : vector<8x32xf32>
    %245 = arith.mulf %240, %242 : vector<8x32xf32>
    %246 = arith.addf %244, %245 : vector<8x32xf32>
    %247 = math.tanh %246 : vector<8x32xf32>
    %248 = arith.mulf %243, %247 : vector<8x32xf32>
    %c32_85 = arith.constant 32 : index
    %c0_86 = arith.constant 0 : index
    %249 = vector.load %arg9[%c32_85, %c0_86] : memref<64x128xf32, #tpu.memory_space<vmem>>, vector<8x128xf32>
    %cst_87 = arith.constant dense<0.000000e+00> : vector<8x128xf32>
    %250 = tpu.matmul %248, %174, %cst_87 {dimension_numbers = #tpu.dot_dimension_numbers<[1], [0], [0], [1], [0, 0, 1, 1], [], []>} : vector<8x32xf32>, vector<32x128xf32>, vector<8x128xf32> -> vector<8x128xf32>
    %251 = arith.addf %249, %250 : vector<8x128xf32>
    %252 = arith.negf %251 : vector<8x128xf32>
    %253 = math.exp %252 : vector<8x128xf32>
    %cst_88 = arith.constant 1.000000e+00 : f32
    %254 = vector.broadcast %cst_88 : f32 to vector<8x128xf32>
    %255 = arith.addf %254, %253 : vector<8x128xf32>
    %256 = arith.divf %254, %255 : vector<8x128xf32>
    %257 = math.tanh %251 : vector<8x128xf32>
    %258 = vector.extract_strided_slice %256 {offsets = [0, 0], sizes = [8, 32], strides = [1, 1]} : vector<8x128xf32> to vector<8x32xf32>
    %259 = vector.extract_strided_slice %256 {offsets = [0, 32], sizes = [8, 32], strides = [1, 1]} : vector<8x128xf32> to vector<8x32xf32>
    %260 = vector.extract_strided_slice %257 {offsets = [0, 64], sizes = [8, 32], strides = [1, 1]} : vector<8x128xf32> to vector<8x32xf32>
    %261 = vector.extract_strided_slice %256 {offsets = [0, 96], sizes = [8, 32], strides = [1, 1]} : vector<8x128xf32> to vector<8x32xf32>
    %262 = arith.mulf %259, %246 : vector<8x32xf32>
    %263 = arith.mulf %258, %260 : vector<8x32xf32>
    %264 = arith.addf %262, %263 : vector<8x32xf32>
    %265 = math.tanh %264 : vector<8x32xf32>
    %266 = arith.mulf %261, %265 : vector<8x32xf32>
    %c40_89 = arith.constant 40 : index
    %c0_90 = arith.constant 0 : index
    %267 = vector.load %arg9[%c40_89, %c0_90] : memref<64x128xf32, #tpu.memory_space<vmem>>, vector<8x128xf32>
    %cst_91 = arith.constant dense<0.000000e+00> : vector<8x128xf32>
    %268 = tpu.matmul %266, %174, %cst_91 {dimension_numbers = #tpu.dot_dimension_numbers<[1], [0], [0], [1], [0, 0, 1, 1], [], []>} : vector<8x32xf32>, vector<32x128xf32>, vector<8x128xf32> -> vector<8x128xf32>
    %269 = arith.addf %267, %268 : vector<8x128xf32>
    %270 = arith.negf %269 : vector<8x128xf32>
    %271 = math.exp %270 : vector<8x128xf32>
    %cst_92 = arith.constant 1.000000e+00 : f32
    %272 = vector.broadcast %cst_92 : f32 to vector<8x128xf32>
    %273 = arith.addf %272, %271 : vector<8x128xf32>
    %274 = arith.divf %272, %273 : vector<8x128xf32>
    %275 = math.tanh %269 : vector<8x128xf32>
    %276 = vector.extract_strided_slice %274 {offsets = [0, 0], sizes = [8, 32], strides = [1, 1]} : vector<8x128xf32> to vector<8x32xf32>
    %277 = vector.extract_strided_slice %274 {offsets = [0, 32], sizes = [8, 32], strides = [1, 1]} : vector<8x128xf32> to vector<8x32xf32>
    %278 = vector.extract_strided_slice %275 {offsets = [0, 64], sizes = [8, 32], strides = [1, 1]} : vector<8x128xf32> to vector<8x32xf32>
    %279 = vector.extract_strided_slice %274 {offsets = [0, 96], sizes = [8, 32], strides = [1, 1]} : vector<8x128xf32> to vector<8x32xf32>
    %280 = arith.mulf %277, %264 : vector<8x32xf32>
    %281 = arith.mulf %276, %278 : vector<8x32xf32>
    %282 = arith.addf %280, %281 : vector<8x32xf32>
    %283 = math.tanh %282 : vector<8x32xf32>
    %284 = arith.mulf %279, %283 : vector<8x32xf32>
    %c48_93 = arith.constant 48 : index
    %c0_94 = arith.constant 0 : index
    %285 = vector.load %arg9[%c48_93, %c0_94] : memref<64x128xf32, #tpu.memory_space<vmem>>, vector<8x128xf32>
    %cst_95 = arith.constant dense<0.000000e+00> : vector<8x128xf32>
    %286 = tpu.matmul %284, %174, %cst_95 {dimension_numbers = #tpu.dot_dimension_numbers<[1], [0], [0], [1], [0, 0, 1, 1], [], []>} : vector<8x32xf32>, vector<32x128xf32>, vector<8x128xf32> -> vector<8x128xf32>
    %287 = arith.addf %285, %286 : vector<8x128xf32>
    %288 = arith.negf %287 : vector<8x128xf32>
    %289 = math.exp %288 : vector<8x128xf32>
    %cst_96 = arith.constant 1.000000e+00 : f32
    %290 = vector.broadcast %cst_96 : f32 to vector<8x128xf32>
    %291 = arith.addf %290, %289 : vector<8x128xf32>
    %292 = arith.divf %290, %291 : vector<8x128xf32>
    %293 = math.tanh %287 : vector<8x128xf32>
    %294 = vector.extract_strided_slice %292 {offsets = [0, 0], sizes = [8, 32], strides = [1, 1]} : vector<8x128xf32> to vector<8x32xf32>
    %295 = vector.extract_strided_slice %292 {offsets = [0, 32], sizes = [8, 32], strides = [1, 1]} : vector<8x128xf32> to vector<8x32xf32>
    %296 = vector.extract_strided_slice %293 {offsets = [0, 64], sizes = [8, 32], strides = [1, 1]} : vector<8x128xf32> to vector<8x32xf32>
    %297 = vector.extract_strided_slice %292 {offsets = [0, 96], sizes = [8, 32], strides = [1, 1]} : vector<8x128xf32> to vector<8x32xf32>
    %298 = arith.mulf %295, %282 : vector<8x32xf32>
    %299 = arith.mulf %294, %296 : vector<8x32xf32>
    %300 = arith.addf %298, %299 : vector<8x32xf32>
    %301 = math.tanh %300 : vector<8x32xf32>
    %302 = arith.mulf %297, %301 : vector<8x32xf32>
    %c56_97 = arith.constant 56 : index
    %c0_98 = arith.constant 0 : index
    %303 = vector.load %arg9[%c56_97, %c0_98] : memref<64x128xf32, #tpu.memory_space<vmem>>, vector<8x128xf32>
    %cst_99 = arith.constant dense<0.000000e+00> : vector<8x128xf32>
    %304 = tpu.matmul %302, %174, %cst_99 {dimension_numbers = #tpu.dot_dimension_numbers<[1], [0], [0], [1], [0, 0, 1, 1], [], []>} : vector<8x32xf32>, vector<32x128xf32>, vector<8x128xf32> -> vector<8x128xf32>
    %305 = arith.addf %303, %304 : vector<8x128xf32>
    %306 = arith.negf %305 : vector<8x128xf32>
    %307 = math.exp %306 : vector<8x128xf32>
    %cst_100 = arith.constant 1.000000e+00 : f32
    %308 = vector.broadcast %cst_100 : f32 to vector<8x128xf32>
    %309 = arith.addf %308, %307 : vector<8x128xf32>
    %310 = arith.divf %308, %309 : vector<8x128xf32>
    %311 = math.tanh %305 : vector<8x128xf32>
    %312 = vector.extract_strided_slice %310 {offsets = [0, 0], sizes = [8, 32], strides = [1, 1]} : vector<8x128xf32> to vector<8x32xf32>
    %313 = vector.extract_strided_slice %310 {offsets = [0, 32], sizes = [8, 32], strides = [1, 1]} : vector<8x128xf32> to vector<8x32xf32>
    %314 = vector.extract_strided_slice %311 {offsets = [0, 64], sizes = [8, 32], strides = [1, 1]} : vector<8x128xf32> to vector<8x32xf32>
    %315 = vector.extract_strided_slice %310 {offsets = [0, 96], sizes = [8, 32], strides = [1, 1]} : vector<8x128xf32> to vector<8x32xf32>
    %316 = arith.mulf %313, %300 : vector<8x32xf32>
    %317 = arith.mulf %312, %314 : vector<8x32xf32>
    %318 = arith.addf %316, %317 : vector<8x32xf32>
    %319 = math.tanh %318 : vector<8x32xf32>
    %320 = arith.mulf %315, %319 : vector<8x32xf32>
    %c0_101 = arith.constant 0 : index
    %c0_102 = arith.constant 0 : index
    %321 = vector.load %arg5[%c0_101, %c0_102] : memref<32x32xf32, #tpu.memory_space<vmem>>, vector<32x32xf32>
    %cst_103 = arith.constant dense<0.000000e+00> : vector<8x32xf32>
    %322 = tpu.matmul %320, %321, %cst_103 {dimension_numbers = #tpu.dot_dimension_numbers<[1], [0], [0], [1], [0, 0, 1, 1], [], []>} : vector<8x32xf32>, vector<32x32xf32>, vector<8x32xf32> -> vector<8x32xf32>
    %c0_104 = arith.constant 0 : index
    %c0_105 = arith.constant 0 : index
    %323 = vector.load %arg6[%c0_104, %c0_105] : memref<1x32xf32, #tpu.memory_space<vmem>>, vector<1x32xf32>
    %324 = vector.broadcast %323 : vector<1x32xf32> to vector<8x32xf32>
    %325 = arith.addf %322, %324 : vector<8x32xf32>
    %c0_106 = arith.constant 0 : index
    %c0_107 = arith.constant 0 : index
    %326 = vector.load %arg7[%c0_106, %c0_107] : memref<8x32xf32, #tpu.memory_space<vmem>>, vector<8x32xf32>
    tpu.vector_store %arg7[%c0_106, %c0_107], %325 {strides = array<i32>} : memref<8x32xf32, #tpu.memory_space<vmem>>, vector<8x32xf32>,
    return
  }
}

</mosaic_0001>

<bundles_post_ra>
// kernel: tpu_custom_call.1
= control target key start
LH: loop header
LB: loop body
LE: loop exit
PB: predicated region body
PF: predicated region fallthrough
CT: control target
= control target key end

     0   :  { %12 = vsyncpa [#allocation5], 0  ;;  %s3169_s0 = inlined_call_operand.vmem [shape: f32[64,32], index: 0, kind: input, shape index: {}]   ;;  %s3170_s1 = inlined_call_operand.vmem [shape: f32[32,128], index: 1, kind: input, shape index: {}]   ;;  %s3171_s2 = inlined_call_operand.hbm [shape: f32[1,32,128], index: 2, kind: input, shape index: {}]   ;;  %s3172_s3 = inlined_call_operand.vmem [shape: f32[2,32,128], index: 3, kind: input, shape index: {}]   ;;  %s3173_s4 = inlined_call_operand.vmem [shape: f32[2,1,128], index: 4, kind: input, shape index: {}]   ;;  %s3174_s5 = inlined_call_operand.hbm [shape: f32[32,32], index: 5, kind: input, shape index: {}]   ;;  %s3175_s6 = inlined_call_operand.vmem [shape: f32[1,32], index: 6, kind: input, shape index: {}]   ;;  %s3176_s7 = inlined_call_operand.hbm [shape: f32[8,32], index: 7, kind: output, shape index: {}]  }
   0x1   :  { %13 = vsyncpa [#allocation8], 0 }
   0x2   :  { %14 = vsyncpa [#allocation6], 0  ;;  %s2703_s24 = smov [#allocation4]  }
   0x3   :  { %s24_s25 = sshll.u32 %s2703_s24, 4  ;;  %s25_s25 = int_to_ptr.vmem [resolvable:$true] %s24_s25 }
   0x4   :  { %s2645_s26 = scalar_lea.vmem %s25_s25, 512  ;;  %p2650_p1 = scmp.lt.s32.totalorder %s25_s25, %s25_s25 }
   0x5   :  { %p2646_p0 = scmp.ne.s32.totalorder %s25_s25, %s2645_s26  ;;  %p2651_p2 = scmp.lt.s32.totalorder %s2645_s26, %s2645_s26 }
   0x7   :  { %p2652_p3 = por %p2651_p2, %p2650_p1 }
   0x9   :  { %p2653_p4 = pnand %p2652_p3, %p2646_p0 }
   0xb   :  { %2656 = shalt.err (!%p2653_p4)
}
   0xc   :  { %s2704_s27 = smov 128   ;;  %s2705_s28 = smov 8  }
   0xd   :  { %30 = dma.hbm_to_vmem [thread:$0]  %s3171_s2, 512, %s25_s25, [#allocation5], %s2704_s27, %s2704_s27, %s2705_s28  }
   0xe   :  { %s2706_s8 = smov [#allocation7]  }
   0xf   :  { %s40_s9 = sshll.u32 %s2706_s8, 4  ;;  %s41_s9 = int_to_ptr.vmem [resolvable:$true] %s40_s9 }
  0x10   :  { %s2665_s10 = scalar_lea.vmem %s41_s9, 512  ;;  %p2670_p6 = scmp.lt.s32.totalorder %s41_s9, %s41_s9 }
  0x11   :  { %p2666_p5 = scmp.ne.s32.totalorder %s41_s9, %s2665_s10  ;;  %p2671_p7 = scmp.lt.s32.totalorder %s2665_s10, %s2665_s10 }
  0x13   :  { %p2672_p8 = por %p2671_p7, %p2670_p6 }
  0x15   :  { %p2673_p9 = pnand %p2672_p8, %p2666_p5 }
  0x17   :  { %2676 = shalt.err (!%p2673_p9)
}
  0x18   :  { %46 = dma.hbm_to_vmem [thread:$0]  %s3174_s5, 512, %s41_s9, [#allocation8], %s2704_s27, %s2704_s27, %s2705_s28  }
  0x19   :  { %2697 = dma.done.wait [#allocation5], 512  }
  0x1a   :  { %2698 = vsyncadd [#allocation5], 4294966784 }
  0x1b   :  { %2699 = dma.done.wait [#allocation8], 512  }
  0x1c   :  { %2700 = vsyncadd [#allocation8], 4294966784  ;;  %v2707_v0 = vmov 0.0   ;;  %vm2708_vm0 = vmmov 0   ;;  %v66_v1 = vld [vmem:[%s3170_s1 + $0x18] sm:$0xff]  ;;  %v65_v2 = vld [vmem:[%s3170_s1 + $0x10] sm:$0xff] }
  0x1d   :  { %2293 = vmatprep.subr.mxu1 %v2707_v0  ;;  %2301 = vmatprep.mubr.msk.f32.mxu1 %vm2708_vm0, %v2707_v0  ;;  %v2770_v3 = vld [vmem:[%s3172_s3 + $0x18] sm:$0xff]  ;;  %v2776_v4 = vld [vmem:[%s3172_s3 + $0x10] sm:$0xff]  ;;  %v64_v5 = vld [vmem:[%s3170_s1 + $0x8] sm:$0xff]  ;;  %vm74_vm1 = vcmask 261120   ;;  %s2709_s9 = smov 64   ;;  %s2710_s10 = smov 32  }
  0x1e   :  { %2273 = vmatprep.subr.mxu0 %v66_v1  ;;  %2294 = vmatpush3.msra.mxu1 %v2770_v3  ;;  %v55_v6 = vld [vmem:[%s3169_s0] sm:$0xff]  ;;  %v2789_v7 = vld [vmem:[%s3172_s3 + $0x8] sm:$0xff]  ;;  %v57_v46 = vld [vmem:[%s3169_s0 + $0x10] sm:$0xff]  ;;  %s2711_s30 = smov [#allocation9]  }
  0x1f   :  { %2274 = vmatpush3.msra.mxu0 %v66_v1  ;;  %2295 = vmatprep.subr.mxu1 %v2707_v0  ;;  %v63_v8 = vld [vmem:[%s3170_s1] sm:$0xff]  ;;  %v56_v10 = vld [vmem:[%s3169_s0 + $0x8] sm:$0xff]  ;;  %v58_v47 = vld [vmem:[%s3169_s0 + $0x18] sm:$0xff]  ;;  %s2099_s1 = sshll.u32 %s2711_s30, 4  ;;  %s2100_s1 = int_to_ptr.vmem [resolvable:$true] %s2099_s1 }
  0x20   :  { %2275 = vmatprep.subr.mxu0 %v65_v2  ;;  %2296 = vmatpush3.msra.mxu1 %v2776_v4  ;;  %v2799_v9 = vld [vmem:[%s3172_s3] sm:$0xff]  ;;  %v60_v49 = vld [vmem:[%s3169_s0 + $0x28] sm:$0xff]  ;;  %v61_v50 = vld [vmem:[%s3169_s0 + $0x30] sm:$0xff]  ;;  %s2677_s8 = scalar_lea.vmem %s2100_s1, 128  ;;  %p2682_p11 = scmp.lt.s32.totalorder %s2100_s1, %s2100_s1 }
  0x21   :  { %2276 = vmatpush3.msra.mxu0 %v65_v2  ;;  %2297 = vmatprep.subr.mxu1 %v2707_v0  ;;  %v2832_v13 = vld [vmem:[%s3173_s4] ss:$0 sm:$0xff]  ;;  %v62_v51 = vld [vmem:[%s3169_s0 + $0x38] sm:$0xff]  ;;  %p2678_p10 = scmp.ne.s32.totalorder %s2100_s1, %s2677_s8  ;;  %p2683_p12 = scmp.lt.s32.totalorder %s2677_s8, %s2677_s8 }
  0x22   :  { %2277 = vmatprep.subr.mxu0 %v64_v5  ;;  %2281 = vmatprep.mubr.msk.f32.mxu0 %vm74_vm1, %v55_v6  ;;  %v59_v48 = vld [vmem:[%s3169_s0 + $0x20] sm:$0xff] }
  0x23   :  { %2278 = vmatpush3.msra.mxu0 %v64_v5  ;;  %2298 = vmatpush3.msra.mxu1 %v2789_v7  ;;  %p2684_p13 = por %p2683_p12, %p2682_p11 }
  0x24   :  { %2279 = vmatprep.subr.mxu0 %v63_v8  ;;  %2299 = vmatprep.subr.mxu1 %v2707_v0 }
  0x25   :  { %2280 = vmatpush3.msra.mxu0 %v63_v8  ;;  %2300 = vmatpush3.msra.mxu1 %v2799_v9  ;;  %p2685_p0 = pnand %p2684_p13, %p2678_p10 }
  0x26   :  { %2282 = vmatmul.mubr.msk.f32.vlgmr.msra.gmra.mxu0 %vm74_vm1, %v56_v10  ;;  %2302 = vmatmul.mubr.f32.vlgmr.msra.gmra.mxu1 %v2707_v0 }
  0x27   :  { %2304 = vmatprep.subr.mxu1 %v2707_v0  ;;  %2312 = vmatprep.mubr.msk.f32.mxu1 %vm2708_vm0, %v2707_v0 }
  0x28   :  { %2305 = vmatpush3.msra.mxu1 %v2770_v3  ;;  %2315 = vmatprep.subr.mxu0 %v2707_v0 }
  0x29   :  { %2306 = vmatprep.subr.mxu1 %v2707_v0  ;;  %2316 = vmatpush3.msra.mxu0 %v2770_v3 }
  0x2a   :  { %2307 = vmatpush3.msra.mxu1 %v2776_v4  ;;  %2317 = vmatprep.subr.mxu0 %v2707_v0 }
  0x2b   :  { %2308 = vmatprep.subr.mxu1 %v2707_v0  ;;  %2318 = vmatpush3.msra.mxu0 %v2776_v4 }
  0x2c   :  { %2309 = vmatpush3.msra.mxu1 %v2789_v7  ;;  %2319 = vmatprep.subr.mxu0 %v2707_v0 }
  0x2d   :  { %2310 = vmatprep.subr.mxu1 %v2707_v0  ;;  %2320 = vmatpush3.msra.mxu0 %v2789_v7 }
  0x2e   :  { %2311 = vmatpush3.msra.mxu1 %v2799_v9  ;;  %2321 = vmatprep.subr.mxu0 %v2707_v0 }
  0x2f   :  { %2322 = vmatpush3.msra.mxu0 %v2799_v9  ;;  %2326 = vmatprep.subr.mxu1 %v2707_v0 }
  0x30   :  { %2337 = vmatprep.subr.mxu0 %v2707_v0  ;;  %2284 = vmatprep.mubr.msk.f32.mxu0 %vm74_vm1, %v57_v46 }
  0x31   :  { %2285 = vmatmul.mubr.msk.f32.gmra.mxu0 %vm74_vm1, %v58_v47 }
  0x32   :  { %2287 = vmatprep.mubr.msk.f32.mxu0 %vm74_vm1, %v59_v48 }
  0x35   :  { %2288 = vmatmul.mubr.msk.f32.gmra.mxu0 %vm74_vm1, %v60_v49 }
  0x36   :  { %2290 = vmatprep.mubr.msk.f32.mxu0 %vm74_vm1, %v61_v50 }
  0x39   :  { %2291 = vmatmul.mubr.msk.f32.gmra.mxu0 %vm74_vm1, %v62_v51 }
  0x3a   :  { %2323 = vmatprep.mubr.msk.f32.mxu0 %vm2708_vm0, %v2707_v0 }
  0xe6   :  { %v2283_v11 = vpop.f32.mrf.mxu0  ;;  %v286_v12 = vpop.f32.mrf.mxu1 }
  0xe7   :  { %v171_v32 = vadd.f32 %v2283_v11, %v2832_v13 }
  0xe8   :  { %v165_v14 = vpop.f32.mrf.mxu0  ;;  %v2303_v15 = vpop.f32.mrf.mxu1 }
  0xe9   :  { %v166_v16 = vadd.f32 %v2832_v13, %v165_v14 }
  0xeb   :  { %v290_v17 = vadd.f32 %v286_v12, %v166_v16 }
  0xed   :  { %2509 = vtanh.f32 %v290_v17  ;;  %v2118_v19 = vmul.f32 -1.442695, %v290_v17 }
  0xef   :  { %2511 = vpow2.f32 %v2118_v19 }
  0xf1   :  { %v2286_v56 = vpop.f32.mrf.mxu0 }
  0xf3   :  { %v175_v57 = vpop.f32.mrf.mxu0 }
  0xf4   :  { %v176_v62 = vadd.f32 %v2832_v13, %v175_v57 }
  0xf5   :  { %v2894_v58 = vpop.f32.mrf.mxu0 }
  0xf7   :  { %v2896_v59 = vpop.f32.mrf.mxu0 }
  0xf9   :  { %v2898_v60 = vpop.f32.mrf.mxu0 }
  0xfa   :  { %v2510_v18 = vpop.eup %2509 }
  0xfb   :  { %300 = vrot.lane.b32.xlu0 %v2510_v18, %s2709_s9  ;;  %v2900_v61 = vpop.f32.mrf.mxu0 }
  0xfc   :  { %v2512_v20 = vpop.eup %2511 }
  0xfd   :  { %v294_v21 = vadd.f32 1.0, %v2512_v20 }
  0xff   :  { %2513 = vrcp.f32 %v294_v21 }
 0x10c   :  { %v2514_v22 = vpop.eup %2513 }
 0x10d   :  { %v298_v25 = vmul.f32 0.0, %v2514_v22 }
 0x16d   :  { %v301_v23 = vpop.permute.xlu0 %300 }
 0x16e   :  { %v303_v24 = vmul.f32 %v2514_v22, %v301_v23 }
 0x170   :  { %305 = vrot.lane.b32.xlu0 %v303_v24, %s2710_s10 }
 0x1e2   :  { %v306_v26 = vpop.permute.xlu0 %305 }
 0x1e3   :  { %v308_v27 = vadd.f32 %v306_v26, %v298_v25 }
 0x1e5   :  { %2515 = vtanh.f32 %v308_v27 }
 0x1f2   :  { %v2516_v28 = vpop.eup %2515 }
 0x1f3   :  { %311 = vrot.lane.b32.xlu1 %v2516_v28, %s2709_s9 }
 0x265   :  { %v312_v29 = vpop.permute.xlu1 %311 }
 0x266   :  { %v314_v30 = vmul.f32 %v2514_v22, %v312_v29  ;;  %v181_v22 = vadd.f32 %v2286_v56, %v2832_v13 }
 0x268   :  { %316 = vrot.lane.b32.xlu1 %v314_v30, %s2710_s10 }
 0x2da   :  { %v317_v31 = vpop.permute.xlu1 %316 }
 0x2db   :  { %319 = vst.msk [vmem:[#allocation2] sm:$0xff] %vm74_vm1, %v317_v31  ;;  %2313 = vmatmul.mubr.msk.f32.vlgmr.msra.gmra.mxu1 %vm74_vm1, %v317_v31 }
 0x2dc   :  { %2327 = vmatpush3.msra.mxu1 %v2770_v3  ;;  %2334 = vmatprep.mubr.msk.f32.mxu1 %vm2708_vm0, %v2707_v0 }
 0x2dd   :  { %2328 = vmatprep.subr.mxu1 %v2707_v0 }
 0x2de   :  { %2329 = vmatpush3.msra.mxu1 %v2776_v4 }
 0x2df   :  { %2330 = vmatprep.subr.mxu1 %v2707_v0 }
 0x2e0   :  { %2331 = vmatpush3.msra.mxu1 %v2789_v7 }
 0x2e1   :  { %2332 = vmatprep.subr.mxu1 %v2707_v0 }
 0x2e2   :  { %2333 = vmatpush3.msra.mxu1 %v2799_v9 }
 0x2e3   :  { %2348 = vmatprep.subr.mxu1 %v2707_v0 }
 0x39b   :  { %v389_v33 = vpop.f32.mrf.mxu1 }
 0x39c   :  { %v393_v34 = vadd.f32 %v389_v33, %v171_v32 }
 0x39d   :  { %v2314_v35 = vpop.f32.mrf.mxu1 }
 0x39e   :  { %2517 = vtanh.f32 %v393_v34  ;;  %v2120_v37 = vmul.f32 -1.442695, %v393_v34 }
 0x3a0   :  { %2519 = vpow2.f32 %v2120_v37 }
 0x3ab   :  { %v2518_v36 = vpop.eup %2517 }
 0x3ac   :  { %403 = vrot.lane.b32.xlu0 %v2518_v36, %s2709_s9 }
 0x3ad   :  { %v2520_v38 = vpop.eup %2519 }
 0x3ae   :  { %v397_v39 = vadd.f32 1.0, %v2520_v38 }
 0x3b0   :  { %2521 = vrcp.f32 %v397_v39 }
 0x3bd   :  { %v2522_v40 = vpop.eup %2521 }
 0x3be   :  { %v401_v43 = vmul.f32 %v2522_v40, %v308_v27 }
 0x41e   :  { %v404_v41 = vpop.permute.xlu0 %403 }
 0x41f   :  { %v406_v42 = vmul.f32 %v2522_v40, %v404_v41 }
 0x421   :  { %408 = vrot.lane.b32.xlu1 %v406_v42, %s2710_s10 }
 0x493   :  { %v409_v44 = vpop.permute.xlu1 %408 }
 0x494   :  { %v411_v45 = vadd.f32 %v409_v44, %v401_v43 }
 0x496   :  { %2523 = vtanh.f32 %v411_v45 }
 0x4a3   :  { %v2524_v52 = vpop.eup %2523 }
 0x4a4   :  { %414 = vrot.lane.b32.xlu0 %v2524_v52, %s2709_s9 }
 0x516   :  { %v415_v53 = vpop.permute.xlu0 %414 }
 0x517   :  { %v417_v54 = vmul.f32 %v2522_v40, %v415_v53  ;;  %v186_v40 = vadd.f32 %v2832_v13, %v2896_v59 }
 0x519   :  { %419 = vrot.lane.b32.xlu1 %v417_v54, %s2710_s10 }
 0x58b   :  { %v420_v55 = vpop.permute.xlu1 %419 }
 0x58c   :  { %422 = vst.msk [vmem:[#allocation2 + $0x8] sm:$0xff] %vm74_vm1, %v420_v55  ;;  %2324 = vmatmul.mubr.msk.f32.vlgmr.msra.gmra.mxu0 %vm74_vm1, %v420_v55 }
 0x58d   :  { %2338 = vmatpush3.msra.mxu0 %v2770_v3  ;;  %2345 = vmatprep.mubr.msk.f32.mxu0 %vm2708_vm0, %v2707_v0 }
 0x58e   :  { %2339 = vmatprep.subr.mxu0 %v2707_v0 }
 0x58f   :  { %2340 = vmatpush3.msra.mxu0 %v2776_v4 }
 0x590   :  { %2341 = vmatprep.subr.mxu0 %v2707_v0 }
 0x591   :  { %2342 = vmatpush3.msra.mxu0 %v2789_v7 }
 0x592   :  { %2343 = vmatprep.subr.mxu0 %v2707_v0 }
 0x593   :  { %2344 = vmatpush3.msra.mxu0 %v2799_v9 }
 0x594   :  { %2359 = vmatprep.subr.mxu0 %v2707_v0 }
 0x64c   :  { %v492_v63 = vpop.f32.mrf.mxu0 }
 0x64d   :  { %v496_v1 = vadd.f32 %v492_v63, %v176_v62 }
 0x64e   :  { %v2325_v2 = vpop.f32.mrf.mxu0 }
 0x64f   :  { %2525 = vtanh.f32 %v496_v1  ;;  %v2122_v6 = vmul.f32 -1.442695, %v496_v1 }
 0x651   :  { %2527 = vpow2.f32 %v2122_v6 }
 0x65c   :  { %v2526_v5 = vpop.eup %2525 }
 0x65d   :  { %506 = vrot.lane.b32.xlu0 %v2526_v5, %s2709_s9 }
 0x65e   :  { %v2528_v8 = vpop.eup %2527 }
 0x65f   :  { %v500_v10 = vadd.f32 1.0, %v2528_v8 }
 0x661   :  { %2529 = vrcp.f32 %v500_v10 }
 0x66e   :  { %v2530_v11 = vpop.eup %2529 }
 0x66f   :  { %v504_v15 = vmul.f32 %v2530_v11, %v411_v45 }
 0x6cf   :  { %v507_v12 = vpop.permute.xlu0 %506 }
 0x6d0   :  { %v509_v14 = vmul.f32 %v2530_v11, %v507_v12 }
 0x6d2   :  { %511 = vrot.lane.b32.xlu1 %v509_v14, %s2710_s10 }
 0x744   :  { %v512_v16 = vpop.permute.xlu1 %511 }
 0x745   :  { %v514_v17 = vadd.f32 %v512_v16, %v504_v15 }
 0x747   :  { %2531 = vtanh.f32 %v514_v17 }
 0x754   :  { %v2532_v18 = vpop.eup %2531 }
 0x755   :  { %517 = vrot.lane.b32.xlu0 %v2532_v18, %s2709_s9  ;;  %v1041_v18 = vld [vmem:[#allocation2] sm:$0xff] }
 0x7c7   :  { %v518_v19 = vpop.permute.xlu0 %517 }
 0x7c8   :  { %v520_v20 = vmul.f32 %v2530_v11, %v518_v19  ;;  %v1052_v11 = vld [vmem:[#allocation4 + $0x18] sm:$0xff]  ;;  %v1050_v19 = vld [vmem:[#allocation4 + $0x8] sm:$0xff] }
 0x7ca   :  { %522 = vrot.lane.b32.xlu1 %v520_v20, %s2710_s10  ;;  %v1049_v20 = vld [vmem:[#allocation4] sm:$0xff] }
 0x83c   :  { %v523_v21 = vpop.permute.xlu1 %522 }
 0x83d   :  { %525 = vst.msk [vmem:[#allocation2 + $0x10] sm:$0xff] %vm74_vm1, %v523_v21  ;;  %2335 = vmatmul.mubr.msk.f32.vlgmr.msra.gmra.mxu1 %vm74_vm1, %v523_v21  ;;  %v1042_v21 = vld [vmem:[#allocation2 + $0x8] sm:$0xff] }
 0x83e   :  { %2349 = vmatpush3.msra.mxu1 %v2770_v3  ;;  %2356 = vmatprep.mubr.msk.f32.mxu1 %vm2708_vm0, %v2707_v0 }
 0x83f   :  { %2350 = vmatprep.subr.mxu1 %v2707_v0 }
 0x840   :  { %2351 = vmatpush3.msra.mxu1 %v2776_v4 }
 0x841   :  { %2352 = vmatprep.subr.mxu1 %v2707_v0 }
 0x842   :  { %2353 = vmatpush3.msra.mxu1 %v2789_v7 }
 0x843   :  { %2354 = vmatprep.subr.mxu1 %v2707_v0 }
 0x844   :  { %2355 = vmatpush3.msra.mxu1 %v2799_v9 }
 0x845   :  { %2370 = vmatprep.subr.mxu1 %v2707_v0 }
 0x8fd   :  { %v595_v23 = vpop.f32.mrf.mxu1 }
 0x8fe   :  { %v599_v24 = vadd.f32 %v595_v23, %v181_v22  ;;  %v1043_v22 = vld [vmem:[#allocation2 + $0x10] sm:$0xff] }
 0x8ff   :  { %v2336_v25 = vpop.f32.mrf.mxu1 }
 0x900   :  { %2533 = vtanh.f32 %v599_v24  ;;  %v2124_v27 = vmul.f32 -1.442695, %v599_v24 }
 0x902   :  { %2535 = vpow2.f32 %v2124_v27 }
 0x90d   :  { %v2534_v26 = vpop.eup %2533 }
 0x90e   :  { %609 = vrot.lane.b32.xlu0 %v2534_v26, %s2709_s9  ;;  %v196_v26 = vadd.f32 %v2832_v13, %v2900_v61 }
 0x90f   :  { %v2536_v28 = vpop.eup %2535 }
 0x910   :  { %v603_v29 = vadd.f32 1.0, %v2536_v28 }
 0x912   :  { %2537 = vrcp.f32 %v603_v29 }
 0x91f   :  { %v2538_v30 = vpop.eup %2537 }
 0x920   :  { %v607_v33 = vmul.f32 %v2538_v30, %v514_v17  ;;  %v1051_v17 = vld [vmem:[#allocation4 + $0x10] sm:$0xff] }
 0x980   :  { %v610_v31 = vpop.permute.xlu0 %609 }
 0x981   :  { %v612_v32 = vmul.f32 %v2538_v30, %v610_v31 }
 0x983   :  { %614 = vrot.lane.b32.xlu1 %v612_v32, %s2710_s10 }
 0x9f5   :  { %v615_v34 = vpop.permute.xlu1 %614 }
 0x9f6   :  { %v617_v35 = vadd.f32 %v615_v34, %v607_v33 }
 0x9f8   :  { %2539 = vtanh.f32 %v617_v35 }
 0xa05   :  { %v2540_v36 = vpop.eup %2539 }
 0xa06   :  { %620 = vrot.lane.b32.xlu0 %v2540_v36, %s2709_s9 }
 0xa78   :  { %v621_v37 = vpop.permute.xlu0 %620 }
 0xa79   :  { %v623_v38 = vmul.f32 %v2538_v30, %v621_v37 }
 0xa7b   :  { %625 = vrot.lane.b32.xlu1 %v623_v38, %s2710_s10 }
 0xaed   :  { %v626_v39 = vpop.permute.xlu1 %625 }
 0xaee   :  { %628 = vst.msk [vmem:[#allocation2 + $0x18] sm:$0xff] %vm74_vm1, %v626_v39  ;;  %2346 = vmatmul.mubr.msk.f32.vlgmr.msra.gmra.mxu0 %vm74_vm1, %v626_v39 }
 0xaef   :  { %2360 = vmatpush3.msra.mxu0 %v2770_v3  ;;  %2367 = vmatprep.mubr.msk.f32.mxu0 %vm2708_vm0, %v2707_v0 }
 0xaf0   :  { %2361 = vmatprep.subr.mxu0 %v2707_v0 }
 0xaf1   :  { %2362 = vmatpush3.msra.mxu0 %v2776_v4 }
 0xaf2   :  { %2363 = vmatprep.subr.mxu0 %v2707_v0 }
 0xaf3   :  { %2364 = vmatpush3.msra.mxu0 %v2789_v7 }
 0xaf4   :  { %2365 = vmatprep.subr.mxu0 %v2707_v0 }
 0xaf5   :  { %2366 = vmatpush3.msra.mxu0 %v2799_v9  ;;  %v1044_v23 = vld [vmem:[#allocation2 + $0x18] sm:$0xff] }
 0xaf6   :  { %2381 = vmatprep.subr.mxu0 %v1052_v11 }
 0xbae   :  { %v698_v41 = vpop.f32.mrf.mxu0 }
 0xbaf   :  { %v702_v42 = vadd.f32 %v698_v41, %v186_v40  ;;  %v2979_v40 = vld [vmem:[%s3172_s3 + $0x38] sm:$0xff]  ;;  %v2985_v41 = vld [vmem:[%s3172_s3 + $0x30] sm:$0xff] }
 0xbb0   :  { %v2347_v43 = vpop.f32.mrf.mxu0 }
 0xbb1   :  { %2541 = vtanh.f32 %v702_v42  ;;  %v2126_v45 = vmul.f32 -1.442695, %v702_v42  ;;  %v2992_v42 = vld [vmem:[%s3172_s3 + $0x28] sm:$0xff]  ;;  %v2999_v43 = vld [vmem:[%s3172_s3 + $0x20] sm:$0xff] }
 0xbb3   :  { %2543 = vpow2.f32 %v2126_v45 }
 0xbbe   :  { %v2542_v44 = vpop.eup %2541 }
 0xbbf   :  { %712 = vrot.lane.b32.xlu0 %v2542_v44, %s2709_s9 }
 0xbc0   :  { %v2544_v46 = vpop.eup %2543 }
 0xbc1   :  { %v706_v47 = vadd.f32 1.0, %v2544_v46 }
 0xbc3   :  { %2545 = vrcp.f32 %v706_v47 }
 0xbd0   :  { %v2546_v48 = vpop.eup %2545 }
 0xbd1   :  { %v710_v51 = vmul.f32 %v2546_v48, %v617_v35 }
 0xc31   :  { %v713_v49 = vpop.permute.xlu0 %712 }
 0xc32   :  { %v715_v50 = vmul.f32 %v2546_v48, %v713_v49 }
 0xc34   :  { %717 = vrot.lane.b32.xlu1 %v715_v50, %s2710_s10 }
 0xca6   :  { %v718_v52 = vpop.permute.xlu1 %717 }
 0xca7   :  { %v720_v53 = vadd.f32 %v718_v52, %v710_v51 }
 0xca9   :  { %2547 = vtanh.f32 %v720_v53 }
 0xcb6   :  { %v2548_v54 = vpop.eup %2547 }
 0xcb7   :  { %723 = vrot.lane.b32.xlu0 %v2548_v54, %s2709_s9  ;;  %v3036_v54 = vld [vmem:[%s3173_s4 + $0x1] ss:$0 sm:$0xff] }
 0xd29   :  { %v724_v55 = vpop.permute.xlu0 %723 }
 0xd2a   :  { %v726_v56 = vmul.f32 %v2546_v48, %v724_v55  ;;  %v201_v48 = vadd.f32 %v2898_v60, %v2832_v13 }
 0xd2c   :  { %728 = vrot.lane.b32.xlu1 %v726_v56, %s2710_s10 }
 0xd9e   :  { %v729_v57 = vpop.permute.xlu1 %728 }
 0xd9f   :  { %731 = vst.msk [vmem:[#allocation2 + $0x20] sm:$0xff] %vm74_vm1, %v729_v57  ;;  %2357 = vmatmul.mubr.msk.f32.vlgmr.msra.gmra.mxu1 %vm74_vm1, %v729_v57 }
 0xda0   :  { %2371 = vmatpush3.msra.mxu1 %v2770_v3  ;;  %2378 = vmatprep.mubr.msk.f32.mxu1 %vm2708_vm0, %v2707_v0  ;;  %v191_v3 = vadd.f32 %v2894_v58, %v2832_v13 }
 0xda1   :  { %2372 = vmatprep.subr.mxu1 %v2707_v0 }
 0xda2   :  { %2373 = vmatpush3.msra.mxu1 %v2776_v4 }
 0xda3   :  { %2374 = vmatprep.subr.mxu1 %v2707_v0 }
 0xda4   :  { %2375 = vmatpush3.msra.mxu1 %v2789_v7 }
 0xda5   :  { %2376 = vmatprep.subr.mxu1 %v2707_v0 }
 0xda6   :  { %2377 = vmatpush3.msra.mxu1 %v2799_v9  ;;  %v1045_v24 = vld [vmem:[#allocation2 + $0x20] sm:$0xff] }
 0xda7   :  { %2401 = vmatprep.subr.mxu1 %v2707_v0 }
 0xe5f   :  { %v801_v59 = vpop.f32.mrf.mxu1 }
 0xe60   :  { %v805_v62 = vadd.f32 %v801_v59, %v191_v3 }
 0xe61   :  { %v2358_v63 = vpop.f32.mrf.mxu1 }
 0xe62   :  { %2549 = vtanh.f32 %v805_v62  ;;  %v2128_v4 = vmul.f32 -1.442695, %v805_v62 }
 0xe64   :  { %2551 = vpow2.f32 %v2128_v4 }
 0xe6f   :  { %v2550_v1 = vpop.eup %2549 }
 0xe70   :  { %815 = vrot.lane.b32.xlu0 %v2550_v1, %s2709_s9 }
 0xe71   :  { %v2552_v2 = vpop.eup %2551 }
 0xe72   :  { %v809_v7 = vadd.f32 1.0, %v2552_v2 }
 0xe74   :  { %2553 = vrcp.f32 %v809_v7 }
 0xe81   :  { %v2554_v5 = vpop.eup %2553 }
 0xe82   :  { %v813_v8 = vmul.f32 %v2554_v5, %v720_v53 }
 0xee2   :  { %v816_v6 = vpop.permute.xlu0 %815 }
 0xee3   :  { %v818_v9 = vmul.f32 %v2554_v5, %v816_v6 }
 0xee5   :  { %820 = vrot.lane.b32.xlu1 %v818_v9, %s2710_s10 }
 0xf57   :  { %v821_v10 = vpop.permute.xlu1 %820 }
 0xf58   :  { %v823_v58 = vadd.f32 %v821_v10, %v813_v8 }
 0xf5a   :  { %2555 = vtanh.f32 %v823_v58 }
 0xf67   :  { %v2556_v12 = vpop.eup %2555 }
 0xf68   :  { %826 = vrot.lane.b32.xlu0 %v2556_v12, %s2709_s9 }
 0xfda   :  { %v827_v14 = vpop.permute.xlu0 %826 }
 0xfdb   :  { %v829_v15 = vmul.f32 %v2554_v5, %v827_v14 }
 0xfdd   :  { %831 = vrot.lane.b32.xlu1 %v829_v15, %s2710_s10 }
0x104f   :  { %v832_v16 = vpop.permute.xlu1 %831 }
0x1050   :  { %834 = vst.msk [vmem:[#allocation2 + $0x28] sm:$0xff] %vm74_vm1, %v832_v16  ;;  %2368 = vmatmul.mubr.msk.f32.vlgmr.msra.gmra.mxu0 %vm74_vm1, %v832_v16 }
0x1051   :  { %2382 = vmatpush3.msra.mxu0 %v1052_v11  ;;  %2389 = vmatprep.mubr.msk.f32.mxu0 %vm74_vm1, %v1041_v18 }
0x1052   :  { %2383 = vmatprep.subr.mxu0 %v1051_v17 }
0x1053   :  { %2384 = vmatpush3.msra.mxu0 %v1051_v17 }
0x1054   :  { %2385 = vmatprep.subr.mxu0 %v1050_v19 }
0x1055   :  { %2386 = vmatpush3.msra.mxu0 %v1050_v19 }
0x1056   :  { %2387 = vmatprep.subr.mxu0 %v1049_v20 }
0x1057   :  { %2388 = vmatpush3.msra.mxu0 %v1049_v20  ;;  %v1046_v25 = vld [vmem:[#allocation2 + $0x28] sm:$0xff] }
0x1058   :  { %2390 = vmatmul.mubr.msk.f32.vlgmr.msra.gmra.mxu0 %vm74_vm1, %v1042_v21  ;;  %2423 = vmatprep.subr.mxu0 %v2707_v0 }
0x1059   :  { %2392 = vmatprep.mubr.msk.f32.mxu0 %vm74_vm1, %v1043_v22  ;;  %2424 = vmatpush3.msra.mxu0 %v2979_v40 }
0x105a   :  { %2425 = vmatprep.subr.mxu0 %v2707_v0 }
0x105b   :  { %2426 = vmatpush3.msra.mxu0 %v2985_v41 }
0x105c   :  { %2393 = vmatmul.mubr.msk.f32.gmra.mxu0 %vm74_vm1, %v1044_v23  ;;  %2427 = vmatprep.subr.mxu0 %v2707_v0 }
0x105d   :  { %2395 = vmatprep.mubr.msk.f32.mxu0 %vm74_vm1, %v1045_v24  ;;  %2428 = vmatpush3.msra.mxu0 %v2992_v42 }
0x105e   :  { %2429 = vmatprep.subr.mxu0 %v2707_v0 }
0x105f   :  { %2430 = vmatpush3.msra.mxu0 %v2999_v43 }
0x1060   :  { %2396 = vmatmul.mubr.msk.f32.gmra.mxu0 %vm74_vm1, %v1046_v25  ;;  %2445 = vmatprep.subr.mxu0 %v2707_v0 }
0x1110   :  { %v904_v27 = vpop.f32.mrf.mxu0 }
0x1111   :  { %v908_v28 = vadd.f32 %v904_v27, %v196_v26 }
0x1112   :  { %v2369_v29 = vpop.f32.mrf.mxu0 }
0x1113   :  { %2557 = vtanh.f32 %v908_v28  ;;  %v2130_v31 = vmul.f32 -1.442695, %v908_v28 }
0x1115   :  { %2559 = vpow2.f32 %v2130_v31 }
0x1118   :  { %v3031_v49 = vpop.f32.mrf.mxu0 }
0x1119   :  { %v1157_v24 = vadd.f32 %v3031_v49, %v3036_v54 }
0x111a   :  { %v1151_v53 = vpop.f32.mrf.mxu0 }
0x111b   :  { %v1152_v55 = vadd.f32 %v3036_v54, %v1151_v53 }
0x1120   :  { %v2558_v30 = vpop.eup %2557 }
0x1121   :  { %918 = vrot.lane.b32.xlu0 %v2558_v30, %s2709_s9 }
0x1122   :  { %v2560_v32 = vpop.eup %2559 }
0x1123   :  { %v912_v33 = vadd.f32 1.0, %v2560_v32 }
0x1125   :  { %2561 = vrcp.f32 %v912_v33 }
0x1132   :  { %v2562_v34 = vpop.eup %2561 }
0x1133   :  { %v916_v37 = vmul.f32 %v2562_v34, %v823_v58 }
0x1193   :  { %v919_v35 = vpop.permute.xlu0 %918 }
0x1194   :  { %v921_v36 = vmul.f32 %v2562_v34, %v919_v35 }
0x1196   :  { %923 = vrot.lane.b32.xlu1 %v921_v36, %s2710_s10 }
0x1208   :  { %v924_v38 = vpop.permute.xlu1 %923 }
0x1209   :  { %v2972_v61 = vadd.f32 %v924_v38, %v916_v37 }
0x120b   :  { %2563 = vtanh.f32 %v2972_v61 }
0x1218   :  { %v2564_v39 = vpop.eup %2563 }
0x1219   :  { %929 = vrot.lane.b32.xlu0 %v2564_v39, %s2709_s9 }
0x128b   :  { %v930_v44 = vpop.permute.xlu0 %929 }
0x128c   :  { %v932_v45 = vmul.f32 %v2562_v34, %v930_v44 }
0x128e   :  { %934 = vrot.lane.b32.xlu1 %v932_v45, %s2710_s10 }
0x1300   :  { %v935_v46 = vpop.permute.xlu1 %934 }
0x1301   :  { %937 = vst.msk [vmem:[#allocation2 + $0x30] sm:$0xff] %vm74_vm1, %v935_v46  ;;  %2379 = vmatmul.mubr.msk.f32.vlgmr.msra.gmra.mxu1 %vm74_vm1, %v935_v46 }
0x1302   :  { %2402 = vmatpush3.msra.mxu1 %v2979_v40  ;;  %2409 = vmatprep.mubr.msk.f32.mxu1 %vm2708_vm0, %v2707_v0 }
0x1303   :  { %2403 = vmatprep.subr.mxu1 %v2707_v0 }
0x1304   :  { %2404 = vmatpush3.msra.mxu1 %v2985_v41 }
0x1305   :  { %2405 = vmatprep.subr.mxu1 %v2707_v0 }
0x1306   :  { %2406 = vmatpush3.msra.mxu1 %v2992_v42 }
0x1307   :  { %2407 = vmatprep.subr.mxu1 %v2707_v0 }
0x1308   :  { %2408 = vmatpush3.msra.mxu1 %v2999_v43  ;;  %v1047_v47 = vld [vmem:[#allocation2 + $0x30] sm:$0xff] }
0x1309   :  { %2410 = vmatmul.mubr.f32.vlgmr.msra.gmra.mxu1 %v2707_v0  ;;  %2398 = vmatprep.mubr.msk.f32.mxu0 %vm74_vm1, %v1047_v47  ;;  %v2394_v47 = vpop.f32.mrf.mxu0 }
0x130a   :  { %2412 = vmatprep.subr.mxu1 %v2707_v0  ;;  %2420 = vmatprep.mubr.msk.f32.mxu1 %vm2708_vm0, %v2707_v0 }
0x130b   :  { %2413 = vmatpush3.msra.mxu1 %v2979_v40 }
0x130c   :  { %2414 = vmatprep.subr.mxu1 %v2707_v0 }
0x130d   :  { %2415 = vmatpush3.msra.mxu1 %v2985_v41 }
0x130e   :  { %2416 = vmatprep.subr.mxu1 %v2707_v0 }
0x130f   :  { %2417 = vmatpush3.msra.mxu1 %v2992_v42 }
0x1310   :  { %2418 = vmatprep.subr.mxu1 %v2707_v0 }
0x1311   :  { %2419 = vmatpush3.msra.mxu1 %v2999_v43 }
0x1312   :  { %2434 = vmatprep.subr.mxu1 %v2707_v0 }
0x13c1   :  { %v1007_v50 = vpop.f32.mrf.mxu1 }
0x13c2   :  { %v1011_v51 = vadd.f32 %v1007_v50, %v201_v48  ;;  %v1161_v48 = vpop.f32.mrf.mxu0 }
0x13c3   :  { %v2380_v52 = vpop.f32.mrf.mxu1  ;;  %v1162_v53 = vadd.f32 %v3036_v54, %v1161_v48 }
0x13c4   :  { %v2132_v8 = vmul.f32 -1.442695, %v1011_v51  ;;  %v3080_v49 = vpop.f32.mrf.mxu0 }
0x13c6   :  { %v3082_v50 = vpop.f32.mrf.mxu0 }
0x13c9   :  { %v1270_v56 = vpop.f32.mrf.mxu1 }
0x13ca   :  { %v1274_v57 = vadd.f32 %v1270_v56, %v1152_v55 }
0x13cb   :  { %v2411_v3 = vpop.f32.mrf.mxu1 }
0x13cc   :  { %2565 = vtanh.f32 %v1274_v57  ;;  %v2147_v13 = vmul.f32 -1.442695, %v1274_v57 }
0x13ce   :  { %2567 = vpow2.f32 %v2147_v13 }
0x13d9   :  { %v2566_v59 = vpop.eup %2565 }
0x13da   :  { %1284 = vrot.lane.b32.xlu0 %v2566_v59, %s2709_s9 }
0x13db   :  { %v2568_v60 = vpop.eup %2567 }
0x13dc   :  { %v1278_v62 = vadd.f32 1.0, %v2568_v60 }
0x13de   :  { %2569 = vrcp.f32 %v1278_v62 }
0x13eb   :  { %v2570_v63 = vpop.eup %2569 }
0x13ec   :  { %v1282_v2 = vmul.f32 0.0, %v2570_v63 }
0x144c   :  { %v1285_v1 = vpop.permute.xlu0 %1284 }
0x144d   :  { %v1287_v4 = vmul.f32 %v2570_v63, %v1285_v1 }
0x144f   :  { %1289 = vrot.lane.b32.xlu1 %v1287_v4, %s2710_s10 }
0x14c1   :  { %v1290_v7 = vpop.permute.xlu1 %1289 }
0x14c2   :  { %v1292_v5 = vadd.f32 %v1290_v7, %v1282_v2 }
0x14c4   :  { %2571 = vtanh.f32 %v1292_v5 }
0x14c5   :  { %2573 = vtanh.f32 %v1011_v51 }
0x14c6   :  { %2575 = vpow2.f32 %v2132_v8 }
0x14d1   :  { %v2572_v6 = vpop.eup %2571 }
0x14d2   :  { %1295 = vrot.lane.b32.xlu0 %v2572_v6, %s2709_s9  ;;  %v2574_v9 = vpop.eup %2573 }
0x14d3   :  { %v2576_v10 = vpop.eup %2575 }
0x14d4   :  { %v1015_v58 = vadd.f32 1.0, %v2576_v10  ;;  %v1167_v10 = vadd.f32 %v2394_v47, %v3036_v54 }
0x14d6   :  { %1021 = vrot.lane.b32.xlu0 %v2574_v9, %s2709_s9  ;;  %2577 = vrcp.f32 %v1015_v58 }
0x14e3   :  { %v2578_v14 = vpop.eup %2577 }
0x14e4   :  { %v1019_v18 = vmul.f32 %v2578_v14, %v2972_v61 }
0x1544   :  { %v1296_v11 = vpop.permute.xlu0 %1295 }
0x1545   :  { %v1298_v12 = vmul.f32 %v2570_v63, %v1296_v11 }
0x1547   :  { %1301 = vrot.lane.b32.xlu1 %v1298_v12, %s2710_s10 }
0x1548   :  { %v1022_v15 = vpop.permute.xlu0 %1021 }
0x1549   :  { %v1024_v16 = vmul.f32 %v2578_v14, %v1022_v15 }
0x154b   :  { %1026 = vrot.lane.b32.xlu0 %v1024_v16, %s2710_s10 }
0x15b9   :  { %v1302_v17 = vpop.permute.xlu1 %1301 }
0x15ba   :  { %2421 = vmatmul.mubr.msk.f32.vlgmr.msra.gmra.mxu1 %vm74_vm1, %v1302_v17 }
0x15bb   :  { %2435 = vmatpush3.msra.mxu1 %v2979_v40  ;;  %2442 = vmatprep.mubr.msk.f32.mxu1 %vm2708_vm0, %v2707_v0 }
0x15bc   :  { %2436 = vmatprep.subr.mxu1 %v2707_v0 }
0x15bd   :  { %v1027_v19 = vpop.permute.xlu0 %1026  ;;  %2437 = vmatpush3.msra.mxu1 %v2985_v41 }
0x15be   :  { %v1029_v20 = vadd.f32 %v1027_v19, %v1019_v18  ;;  %2438 = vmatprep.subr.mxu1 %v2707_v0 }
0x15bf   :  { %2439 = vmatpush3.msra.mxu1 %v2992_v42 }
0x15c0   :  { %2579 = vtanh.f32 %v1029_v20  ;;  %2440 = vmatprep.subr.mxu1 %v2707_v0 }
0x15c1   :  { %2441 = vmatpush3.msra.mxu1 %v2999_v43 }
0x15c2   :  { %2456 = vmatprep.subr.mxu1 %v2707_v0 }
0x15cd   :  { %v2580_v21 = vpop.eup %2579 }
0x15ce   :  { %1032 = vrot.lane.b32.xlu0 %v2580_v21, %s2709_s9 }
0x1640   :  { %v1033_v22 = vpop.permute.xlu0 %1032 }
0x1641   :  { %v1035_v23 = vmul.f32 %v2578_v14, %v1033_v22 }
0x1643   :  { %1037 = vrot.lane.b32.xlu0 %v1035_v23, %s2710_s10 }
0x167a   :  { %v1371_v25 = vpop.f32.mrf.mxu1 }
0x167b   :  { %v1375_v26 = vadd.f32 %v1371_v25, %v1157_v24 }
0x167c   :  { %v2422_v27 = vpop.f32.mrf.mxu1 }
0x167d   :  { %2581 = vtanh.f32 %v1375_v26  ;;  %v2149_v31 = vmul.f32 -1.442695, %v1375_v26 }
0x167f   :  { %2583 = vpow2.f32 %v2149_v31 }
0x168a   :  { %v2582_v28 = vpop.eup %2581 }
0x168b   :  { %1385 = vrot.lane.b32.xlu1 %v2582_v28, %s2709_s9  ;;  %v1172_v28 = vadd.f32 %v3036_v54, %v3082_v50  ;;  %v1177_v50 = vadd.f32 %v3080_v49, %v3036_v54 }
0x168c   :  { %v2584_v32 = vpop.eup %2583 }
0x168d   :  { %v1379_v33 = vadd.f32 1.0, %v2584_v32 }
0x168f   :  { %2585 = vrcp.f32 %v1379_v33 }
0x169c   :  { %v2586_v34 = vpop.eup %2585 }
0x169d   :  { %v1383_v37 = vmul.f32 %v2586_v34, %v1292_v5 }
0x16b5   :  { %v1038_v29 = vpop.permute.xlu0 %1037 }
0x16b6   :  { %1040 = vst.msk [vmem:[#allocation2 + $0x38] sm:$0xff] %vm74_vm1, %v1038_v29 }
0x16bd   :  { %v1048_v30 = vld [vmem:[#allocation2 + $0x38] sm:$0xff] }
0x16be   :  { %2399 = vmatmul.mubr.msk.f32.gmra.mxu0 %vm74_vm1, %v1048_v30 }
0x16bf   :  { %2431 = vmatprep.mubr.msk.f32.mxu0 %vm2708_vm0, %v2707_v0 }
0x16fd   :  { %v1386_v35 = vpop.permute.xlu1 %1385 }
0x16fe   :  { %v1388_v36 = vmul.f32 %v2586_v34, %v1386_v35 }
0x1700   :  { %1390 = vrot.lane.b32.xlu1 %v1388_v36, %s2710_s10 }
0x1772   :  { %v1391_v38 = vpop.permute.xlu1 %1390 }
0x1773   :  { %v1393_v61 = vadd.f32 %v1391_v38, %v1383_v37 }
0x1775   :  { %2587 = vtanh.f32 %v1393_v61 }
0x177e   :  { %v3084_v51 = vpop.f32.mrf.mxu0 }
0x1780   :  { %v3086_v52 = vpop.f32.mrf.mxu0 }
0x1782   :  { %v2588_v39 = vpop.eup %2587 }
0x1783   :  { %1396 = vrot.lane.b32.xlu1 %v2588_v39, %s2709_s9 }
0x17f5   :  { %v1397_v44 = vpop.permute.xlu1 %1396 }
0x17f6   :  { %v1399_v45 = vmul.f32 %v2586_v34, %v1397_v44 }
0x17f8   :  { %1402 = vrot.lane.b32.xlu1 %v1399_v45, %s2710_s10 }
0x186a   :  { %v1403_v46 = vpop.permute.xlu1 %1402 }
0x186b   :  { %2432 = vmatmul.mubr.msk.f32.vlgmr.msra.gmra.mxu0 %vm74_vm1, %v1403_v46 }
0x186c   :  { %2446 = vmatpush3.msra.mxu0 %v2979_v40  ;;  %2453 = vmatprep.mubr.msk.f32.mxu0 %vm2708_vm0, %v2707_v0 }
0x186d   :  { %2447 = vmatprep.subr.mxu0 %v2707_v0 }
0x186e   :  { %2448 = vmatpush3.msra.mxu0 %v2985_v41 }
0x186f   :  { %2449 = vmatprep.subr.mxu0 %v2707_v0 }
0x1870   :  { %2450 = vmatpush3.msra.mxu0 %v2992_v42 }
0x1871   :  { %2451 = vmatprep.subr.mxu0 %v2707_v0 }
0x1872   :  { %2452 = vmatpush3.msra.mxu0 %v2999_v43 }
0x1873   :  { %2467 = vmatprep.subr.mxu0 %v2707_v0 }
0x192b   :  { %v1472_v55 = vpop.f32.mrf.mxu0 }
0x192c   :  { %v1476_v56 = vadd.f32 %v1472_v55, %v1162_v53 }
0x192d   :  { %v2433_v57 = vpop.f32.mrf.mxu0 }
0x192e   :  { %2589 = vtanh.f32 %v1476_v56  ;;  %v2151_v59 = vmul.f32 -1.442695, %v1476_v56 }
0x1930   :  { %2591 = vpow2.f32 %v2151_v59 }
0x193b   :  { %v2590_v3 = vpop.eup %2589 }
0x193c   :  { %1486 = vrot.lane.b32.xlu0 %v2590_v3, %s2709_s9 }
0x193d   :  { %v2592_v13 = vpop.eup %2591 }
0x193e   :  { %v1480_v60 = vadd.f32 1.0, %v2592_v13 }
0x1940   :  { %2593 = vrcp.f32 %v1480_v60 }
0x194d   :  { %v2594_v62 = vpop.eup %2593 }
0x194e   :  { %v1484_v4 = vmul.f32 %v2594_v62, %v1393_v61 }
0x19ae   :  { %v1487_v63 = vpop.permute.xlu0 %1486 }
0x19af   :  { %v1489_v1 = vmul.f32 %v2594_v62, %v1487_v63 }
0x19b1   :  { %1491 = vrot.lane.b32.xlu1 %v1489_v1, %s2710_s10 }
0x1a23   :  { %v1492_v2 = vpop.permute.xlu1 %1491 }
0x1a24   :  { %v1494_v7 = vadd.f32 %v1492_v2, %v1484_v4  ;;  %v1182_v2 = vadd.f32 %v3036_v54, %v3086_v52 }
0x1a26   :  { %2595 = vtanh.f32 %v1494_v7 }
0x1a33   :  { %v2596_v5 = vpop.eup %2595 }
0x1a34   :  { %1497 = vrot.lane.b32.xlu0 %v2596_v5, %s2709_s9 }
0x1aa6   :  { %v1498_v6 = vpop.permute.xlu0 %1497 }
0x1aa7   :  { %v1500_v9 = vmul.f32 %v2594_v62, %v1498_v6 }
0x1aa9   :  { %1503 = vrot.lane.b32.xlu1 %v1500_v9, %s2710_s10 }
0x1b1b   :  { %v1504_v8 = vpop.permute.xlu1 %1503 }
0x1b1c   :  { %2443 = vmatmul.mubr.msk.f32.vlgmr.msra.gmra.mxu1 %vm74_vm1, %v1504_v8 }
0x1b1d   :  { %2457 = vmatpush3.msra.mxu1 %v2979_v40  ;;  %2464 = vmatprep.mubr.msk.f32.mxu1 %vm2708_vm0, %v2707_v0 }
0x1b1e   :  { %2458 = vmatprep.subr.mxu1 %v2707_v0 }
0x1b1f   :  { %2459 = vmatpush3.msra.mxu1 %v2985_v41 }
0x1b20   :  { %2460 = vmatprep.subr.mxu1 %v2707_v0 }
0x1b21   :  { %2461 = vmatpush3.msra.mxu1 %v2992_v42 }
0x1b22   :  { %2462 = vmatprep.subr.mxu1 %v2707_v0 }
0x1b23   :  { %2463 = vmatpush3.msra.mxu1 %v2999_v43 }
0x1b24   :  { %2478 = vmatprep.subr.mxu1 %v2707_v0 }
0x1bdc   :  { %v1573_v58 = vpop.f32.mrf.mxu1 }
0x1bdd   :  { %v1577_v11 = vadd.f32 %v1573_v58, %v1167_v10 }
0x1bde   :  { %v2444_v12 = vpop.f32.mrf.mxu1 }
0x1bdf   :  { %2597 = vtanh.f32 %v1577_v11  ;;  %v2153_v15 = vmul.f32 -1.442695, %v1577_v11 }
0x1be1   :  { %2599 = vpow2.f32 %v2153_v15 }
0x1bec   :  { %v2598_v14 = vpop.eup %2597 }
0x1bed   :  { %1587 = vrot.lane.b32.xlu0 %v2598_v14, %s2709_s9 }
0x1bee   :  { %v2600_v16 = vpop.eup %2599 }
0x1bef   :  { %v1581_v17 = vadd.f32 1.0, %v2600_v16 }
0x1bf1   :  { %2601 = vrcp.f32 %v1581_v17 }
0x1bfe   :  { %v2602_v18 = vpop.eup %2601 }
0x1bff   :  { %v1585_v21 = vmul.f32 %v2602_v18, %v1494_v7 }
0x1c5f   :  { %v1588_v19 = vpop.permute.xlu0 %1587 }
0x1c60   :  { %v1590_v20 = vmul.f32 %v2602_v18, %v1588_v19 }
0x1c62   :  { %1592 = vrot.lane.b32.xlu1 %v1590_v20, %s2710_s10 }
0x1cd4   :  { %v1593_v22 = vpop.permute.xlu1 %1592 }
0x1cd5   :  { %v1595_v23 = vadd.f32 %v1593_v22, %v1585_v21  ;;  %v1187_v21 = vadd.f32 %v3084_v51, %v3036_v54  ;;  %v2009_v51 = vld [vmem:[#allocation7 + $0x18] sm:$0xff] }
0x1cd7   :  { %2603 = vtanh.f32 %v1595_v23 }
0x1ce4   :  { %v2604_v24 = vpop.eup %2603 }
0x1ce5   :  { %1598 = vrot.lane.b32.xlu0 %v2604_v24, %s2709_s9 }
0x1d57   :  { %v1599_v25 = vpop.permute.xlu0 %1598 }
0x1d58   :  { %v1601_v26 = vmul.f32 %v2602_v18, %v1599_v25 }
0x1d5a   :  { %1604 = vrot.lane.b32.xlu1 %v1601_v26, %s2710_s10 }
0x1dcc   :  { %v1605_v27 = vpop.permute.xlu1 %1604 }
0x1dcd   :  { %2454 = vmatmul.mubr.msk.f32.vlgmr.msra.gmra.mxu0 %vm74_vm1, %v1605_v27 }
0x1dce   :  { %2468 = vmatpush3.msra.mxu0 %v2979_v40  ;;  %2475 = vmatprep.mubr.msk.f32.mxu0 %vm2708_vm0, %v2707_v0 }
0x1dcf   :  { %2469 = vmatprep.subr.mxu0 %v2707_v0 }
0x1dd0   :  { %2470 = vmatpush3.msra.mxu0 %v2985_v41 }
0x1dd1   :  { %2471 = vmatprep.subr.mxu0 %v2707_v0 }
0x1dd2   :  { %2472 = vmatpush3.msra.mxu0 %v2992_v42 }
0x1dd3   :  { %2473 = vmatprep.subr.mxu0 %v2707_v0 }
0x1dd4   :  { %2474 = vmatpush3.msra.mxu0 %v2999_v43 }
0x1dd5   :  { %2489 = vmatprep.subr.mxu0 %v2707_v0 }
0x1e8d   :  { %v1674_v29 = vpop.f32.mrf.mxu0 }
0x1e8e   :  { %v1678_v30 = vadd.f32 %v1674_v29, %v1172_v28 }
0x1e8f   :  { %v2455_v31 = vpop.f32.mrf.mxu0 }
0x1e90   :  { %2605 = vtanh.f32 %v1678_v30  ;;  %v2155_v33 = vmul.f32 -1.442695, %v1678_v30 }
0x1e92   :  { %2607 = vpow2.f32 %v2155_v33 }
0x1e9d   :  { %v2606_v32 = vpop.eup %2605 }
0x1e9e   :  { %1688 = vrot.lane.b32.xlu0 %v2606_v32, %s2709_s9 }
0x1e9f   :  { %v2608_v34 = vpop.eup %2607 }
0x1ea0   :  { %v1682_v35 = vadd.f32 1.0, %v2608_v34  ;;  %v2008_v34 = vld [vmem:[#allocation7 + $0x10] sm:$0xff] }
0x1ea2   :  { %2609 = vrcp.f32 %v1682_v35  ;;  %v2007_v35 = vld [vmem:[#allocation7 + $0x8] sm:$0xff] }
0x1eaf   :  { %v2610_v36 = vpop.eup %2609 }
0x1eb0   :  { %v1686_v61 = vmul.f32 %v2610_v36, %v1595_v23 }
0x1f10   :  { %v1689_v37 = vpop.permute.xlu0 %1688 }
0x1f11   :  { %v1691_v38 = vmul.f32 %v2610_v36, %v1689_v37 }
0x1f13   :  { %1693 = vrot.lane.b32.xlu1 %v1691_v38, %s2710_s10 }
0x1f85   :  { %v1694_v39 = vpop.permute.xlu1 %1693 }
0x1f86   :  { %v1696_v44 = vadd.f32 %v1694_v39, %v1686_v61 }
0x1f88   :  { %2611 = vtanh.f32 %v1696_v44 }
0x1f95   :  { %v2612_v45 = vpop.eup %2611 }
0x1f96   :  { %1699 = vrot.lane.b32.xlu0 %v2612_v45, %s2709_s9 }
0x2008   :  { %v1700_v46 = vpop.permute.xlu0 %1699 }
0x2009   :  { %v1702_v47 = vmul.f32 %v2610_v36, %v1700_v46  ;;  %v2006_v36 = vld [vmem:[#allocation7] sm:$0xff] }
0x200b   :  { %1705 = vrot.lane.b32.xlu1 %v1702_v47, %s2710_s10 }
0x207d   :  { %v1706_v48 = vpop.permute.xlu1 %1705 }
0x207e   :  { %2465 = vmatmul.mubr.msk.f32.vlgmr.msra.gmra.mxu1 %vm74_vm1, %v1706_v48 }
0x207f   :  { %2479 = vmatpush3.msra.mxu1 %v2979_v40  ;;  %2486 = vmatprep.mubr.msk.f32.mxu1 %vm2708_vm0, %v2707_v0 }
0x2080   :  { %2480 = vmatprep.subr.mxu1 %v2707_v0 }
0x2081   :  { %2481 = vmatpush3.msra.mxu1 %v2985_v41 }
0x2082   :  { %2482 = vmatprep.subr.mxu1 %v2707_v0 }
0x2083   :  { %2483 = vmatpush3.msra.mxu1 %v2992_v42 }
0x2084   :  { %2484 = vmatprep.subr.mxu1 %v2707_v0 }
0x2085   :  { %2485 = vmatpush3.msra.mxu1 %v2999_v43 }
0x213e   :  { %v1775_v53 = vpop.f32.mrf.mxu1 }
0x213f   :  { %v1779_v40 = vadd.f32 %v1775_v53, %v1177_v50 }
0x2140   :  { %v2466_v55 = vpop.f32.mrf.mxu1 }
0x2141   :  { %2613 = vtanh.f32 %v1779_v40  ;;  %v2157_v57 = vmul.f32 -1.442695, %v1779_v40 }
0x2143   :  { %2615 = vpow2.f32 %v2157_v57 }
0x214e   :  { %v2614_v56 = vpop.eup %2613 }
0x214f   :  { %1789 = vrot.lane.b32.xlu0 %v2614_v56, %s2709_s9 }
0x2150   :  { %v2616_v41 = vpop.eup %2615 }
0x2151   :  { %v1783_v3 = vadd.f32 1.0, %v2616_v41 }
0x2153   :  { %2617 = vrcp.f32 %v1783_v3 }
0x2160   :  { %v2618_v42 = vpop.eup %2617 }
0x2161   :  { %v1787_v43 = vmul.f32 %v2618_v42, %v1696_v44  ;;  %v2162_v44 = vld [vmem:[%s3175_s6] ss:$0 sm:$0xff] }
0x21c1   :  { %v1790_v59 = vpop.permute.xlu0 %1789 }
0x21c2   :  { %v1792_v13 = vmul.f32 %v2618_v42, %v1790_v59 }
0x21c4   :  { %1794 = vrot.lane.b32.xlu1 %v1792_v13, %s2710_s10 }
0x2236   :  { %v1795_v60 = vpop.permute.xlu1 %1794 }
0x2237   :  { %v1797_v49 = vadd.f32 %v1795_v60, %v1787_v43 }
0x2239   :  { %2619 = vtanh.f32 %v1797_v49 }
0x2246   :  { %v2620_v62 = vpop.eup %2619 }
0x2247   :  { %1800 = vrot.lane.b32.xlu0 %v2620_v62, %s2709_s9 }
0x22b9   :  { %v1801_v63 = vpop.permute.xlu0 %1800 }
0x22ba   :  { %v1803_v1 = vmul.f32 %v2618_v42, %v1801_v63 }
0x22bc   :  { %1806 = vrot.lane.b32.xlu1 %v1803_v1, %s2710_s10 }
0x232e   :  { %v1807_v4 = vpop.permute.xlu1 %1806 }
0x232f   :  { %2476 = vmatmul.mubr.msk.f32.vlgmr.msra.gmra.mxu0 %vm74_vm1, %v1807_v4 }
0x2330   :  { %2497 = vmatprep.mubr.msk.f32.mxu0 %vm2708_vm0, %v2707_v0  ;;  %2490 = vmatpush3.msra.mxu0 %v2009_v51 }
0x2331   :  { %2491 = vmatprep.subr.mxu0 %v2707_v0 }
0x2332   :  { %2492 = vmatpush3.msra.mxu0 %v2008_v34 }
0x2333   :  { %2493 = vmatprep.subr.mxu0 %v2707_v0 }
0x2334   :  { %2494 = vmatpush3.msra.mxu0 %v2007_v35 }
0x2335   :  { %2495 = vmatprep.subr.mxu0 %v2707_v0 }
0x2336   :  { %2496 = vmatpush3.msra.mxu0 %v2006_v36 }
0x23ef   :  { %v1876_v7 = vpop.f32.mrf.mxu0 }
0x23f0   :  { %v1880_v5 = vadd.f32 %v1876_v7, %v1182_v2 }
0x23f1   :  { %v2477_v6 = vpop.f32.mrf.mxu0 }
0x23f2   :  { %2621 = vtanh.f32 %v1880_v5  ;;  %v2159_v8 = vmul.f32 -1.442695, %v1880_v5 }
0x23f4   :  { %2623 = vpow2.f32 %v2159_v8 }
0x23ff   :  { %v2622_v9 = vpop.eup %2621 }
0x2400   :  { %1890 = vrot.lane.b32.xlu0 %v2622_v9, %s2709_s9 }
0x2401   :  { %v2624_v10 = vpop.eup %2623 }
0x2402   :  { %v1884_v58 = vadd.f32 1.0, %v2624_v10 }
0x2404   :  { %2625 = vrcp.f32 %v1884_v58 }
0x2411   :  { %v2626_v11 = vpop.eup %2625 }
0x2412   :  { %v1888_v15 = vmul.f32 %v2626_v11, %v1797_v49 }
0x2472   :  { %v1891_v12 = vpop.permute.xlu0 %1890 }
0x2473   :  { %v1893_v14 = vmul.f32 %v2626_v11, %v1891_v12 }
0x2475   :  { %1895 = vrot.lane.b32.xlu1 %v1893_v14, %s2710_s10 }
0x24e7   :  { %v1896_v16 = vpop.permute.xlu1 %1895 }
0x24e8   :  { %v1898_v52 = vadd.f32 %v1896_v16, %v1888_v15 }
0x24ea   :  { %2627 = vtanh.f32 %v1898_v52 }
0x24f7   :  { %v2628_v17 = vpop.eup %2627 }
0x24f8   :  { %1901 = vrot.lane.b32.xlu0 %v2628_v17, %s2709_s9 }
0x256a   :  { %v1902_v18 = vpop.permute.xlu0 %1901 }
0x256b   :  { %v1904_v19 = vmul.f32 %v2626_v11, %v1902_v18 }
0x256d   :  { %1907 = vrot.lane.b32.xlu1 %v1904_v19, %s2710_s10 }
0x25df   :  { %v1908_v20 = vpop.permute.xlu1 %1907 }
0x25e0   :  { %2487 = vmatmul.mubr.msk.f32.vlgmr.msra.gmra.mxu1 %vm74_vm1, %v1908_v20 }
0x26a0   :  { %v1977_v22 = vpop.f32.mrf.mxu1 }
0x26a1   :  { %v1981_v23 = vadd.f32 %v1977_v22, %v1187_v21 }
0x26a2   :  { %v2488_v24 = vpop.f32.mrf.mxu1 }
0x26a3   :  { %2629 = vtanh.f32 %v1981_v23  ;;  %v2161_v26 = vmul.f32 -1.442695, %v1981_v23 }
0x26a5   :  { %2631 = vpow2.f32 %v2161_v26 }
0x26b0   :  { %v2630_v25 = vpop.eup %2629 }
0x26b1   :  { %1991 = vrot.lane.b32.xlu0 %v2630_v25, %s2709_s9 }
0x26b2   :  { %v2632_v27 = vpop.eup %2631 }
0x26b3   :  { %v1985_v28 = vadd.f32 1.0, %v2632_v27 }
0x26b5   :  { %2633 = vrcp.f32 %v1985_v28 }
0x26c2   :  { %v2634_v29 = vpop.eup %2633 }
0x26c3   :  { %v1989_v32 = vmul.f32 %v2634_v29, %v1898_v52 }
0x2723   :  { %v1992_v30 = vpop.permute.xlu0 %1991 }
0x2724   :  { %v1994_v31 = vmul.f32 %v2634_v29, %v1992_v30 }
0x2726   :  { %1996 = vrot.lane.b32.xlu1 %v1994_v31, %s2710_s10 }
0x2798   :  { %v1997_v33 = vpop.permute.xlu1 %1996 }
0x2799   :  { %v1999_v54 = vadd.f32 %v1997_v33, %v1989_v32 }
0x279b   :  { %2635 = vtanh.f32 %v1999_v54 }
0x27a8   :  { %v2636_v37 = vpop.eup %2635 }
0x27a9   :  { %2002 = vrot.lane.b32.xlu0 %v2636_v37, %s2709_s9 }
0x281b   :  { %v2003_v38 = vpop.permute.xlu0 %2002 }
0x281c   :  { %v2005_v61 = vmul.f32 %v2634_v29, %v2003_v38 }
0x281e   :  { %2018 = vrot.lane.b32.xlu1 %v2005_v61, %s2710_s10 }
0x2890   :  { %v2019_v39 = vpop.permute.xlu1 %2018 }
0x2891   :  { %2498 = vmatmul.mubr.msk.f32.vlgmr.msra.gmra.mxu0 %vm74_vm1, %v2019_v39 }
0x2951   :  { %v2088_v45 = vpop.f32.mrf.mxu0 }
0x2952   :  { %v2089_v46 = vadd.f32 %v2162_v44, %v2088_v45 }
0x2953   :  { %v2499_v0 = vpop.f32.mrf.mxu0 }
0x2954   :  { %2092 = vst.msk [vmem:[#allocation9] sm:$0xff] %vm74_vm1, %v2089_v46 }
0x2955   :  { %2688 = shalt.err (!%p2685_p0)
}
0x2956   :  { %2102 = dma.vmem_to_hbm [thread:$0]  %s2100_s1, 128, %s3176_s7, [#allocation6]  }
0x2957   :  { %2701 = dma.done.wait [#allocation6], 128  }
0x2958   :  { %2702 = vsyncadd [#allocation6], 4294967168 }
0x2959   :  { %2106 = vsyncpa [#allocation5], 1 }
0x295a   :  { %2107 = vsyncpa [#allocation8], 1 }
0x295b   :  { %2108 = vsyncpa [#allocation6], 1 }

</bundles_post_ra>
